<compile_context>
chip_gen: v5e
topology: v5e:2x2
jax: 0.10.0
libtpu: 0.0.40
codegen_flags: <defaults>
</compile_context>

<pallas_src>
import functools

import jax
import jax.numpy as jnp
from jax.experimental import pallas as pl


# ------------------------------------------------------------------ kernel 1: fused q/k/v SPDTransform
def _bimap_qkv_kernel(x_ref, wcat_ref, wt_ref, qkv_ref):
    """qkv[t, n] = flatten(W_t^T X_n W_t) for all n at once.

    x    : (N, d_in, d_in)     all bs*m SPD inputs
    wcat : (d_in, 3*d_out)     [Wq | Wk | Wv] concatenated along the lane dim
    wt   : (3, d_out, d_in)    pre-transposed weights (avoids in-kernel transposes)
    out  : (3, N, d_out*d_out) lane-dense flattened bimap outputs
    """
    n, d_in, _ = x_ref.shape
    d_out = wt_ref.shape[1]
    x2 = x_ref[...].reshape(n * d_in, d_in)              # merge leading dims only (layout-safe)
    # X @ [Wq|Wk|Wv] for every n as ONE MXU matmul: (N*d_in, d_in) @ (d_in, 3*d_out)
    xw = jnp.dot(x2, wcat_ref[...], preferred_element_type=jnp.float32)
    for t in range(3):                                    # static unroll over q / k / v
        xw_t = xw[:, t * d_out:(t + 1) * d_out].reshape(n, d_in, d_out)
        wt_b = jnp.broadcast_to(wt_ref[t], (n, d_out, d_in))   # tiny broadcast, hoisted per-t
        # W_t^T (X W_t): canonical batched matmul over n.
        z = jnp.einsum('nai,nik->nak', wt_b, xw_t,
                       preferred_element_type=jnp.float32)
        qkv_ref[t] = z.reshape(n, d_out * d_out)          # lane-dense store


def bimap_qkv(x_flat, w_cat, wt_all):
    n = x_flat.shape[0]
    d_out = wt_all.shape[1]
    return pl.pallas_call(
        _bimap_qkv_kernel,
        out_shape=jax.ShapeDtypeStruct((3, n, d_out * d_out), jnp.float32),
    )(x_flat, w_cat, wt_all)


# ------------------------------------------------------------------ kernel 2: log-recon + attention + exp
def _att_logexp_kernel(u_ref, s_ref, o_ref, *, batch, num_p):
    """Fused log reconstruction, log-Euclidean attention and tensor_exp.

    u : (3, N, d, d) eigenvectors of (Q, K, V),  N = batch * num_p
    s : (3, N, d)    eigenvalues  of (Q, K, V)
    o : (N, d*d)     flattened output SPD matrices (lane-dense store)

    LogEuclideanMean in the reference multiplies a replicated-row matrix, which collapses to
    scaling log V_p by c_p = sum_i softmax(A)[b, i, p]; tensor_exp(c_p * log V_p) therefore
    shares V_p's eigenbasis and becomes U_V diag(eig_V ** c_p) U_V^T  -> no second eigh.
    """
    n = u_ref.shape[1]
    d = u_ref.shape[-1]
    dd = d * d
    logs = jnp.log(jnp.abs(s_ref[...]))                   # (3, N, d); |.| mirrors torch.svd singular values

    def recon(u, diag):                                    # batched U diag(diag) U^T
        us = u * diag[:, None, :]                          # scale eigenvector columns (VPU)
        return jnp.einsum('nia,nja->nij', us, u,
                          preferred_element_type=jnp.float32)

    log_q = recon(u_ref[0], logs[0]).reshape(batch, num_p, dd)
    log_k = recon(u_ref[1], logs[1]).reshape(batch, num_p, dd)

    # atten_energy[b, i, j] = || log K_i - log Q_j ||_F^2
    k2 = jnp.sum(log_k * log_k, axis=-1)[:, :, None]       # (B, m, 1)   (XLU reduce, no ones-matmul)
    q2 = jnp.sum(log_q * log_q, axis=-1)[:, None, :]       # (B, 1, m)
    cross = jnp.einsum('bid,bjd->bij', log_k, log_q,
                       preferred_element_type=jnp.float32)
    energy = jnp.maximum(k2 + q2 - 2.0 * cross, 0.0)

    # atten_prob = softmax(1 / (1 + log(1 + E)), dim=-2)   (divisions go to the EUP slot)
    a = pl.reciprocal(1.0 + jnp.log1p(energy), approx=True)
    a = a - jnp.max(a, axis=-2, keepdims=True)
    ea = jnp.exp(a)
    prob = ea * pl.reciprocal(jnp.sum(ea, axis=-2, keepdims=True), approx=True)   # P[b, i, j]

    # LogEuclideanMean row weight: c[b, p] = sum_i P[b, i, p]  (analytically 1; kept for fidelity)
    c = jnp.sum(prob, axis=-2)                             # (B, m)
    logs_v = logs[2].reshape(batch, num_p, d)
    pow_s = jnp.exp(c[:, :, None] * logs_v)                # eig(V) ** c
    out = recon(u_ref[2], pow_s.reshape(n, d))             # tensor_exp(c * log V)
    o_ref[...] = out.reshape(n, dd)                        # lane-dense flattened store


def attention_logexp(u, s, *, batch, num_p):
    n, d = u.shape[1], u.shape[-1]
    kernel = functools.partial(_att_logexp_kernel, batch=batch, num_p=num_p)
    return pl.pallas_call(
        kernel,
        out_shape=jax.ShapeDtypeStruct((n, d * d), jnp.float32),
    )(u, s)


# ------------------------------------------------------------------ forward
@functools.partial(jax.jit, static_argnames=("bs", "m"))
def _gdatt_core(x_flat, w_cat, wt_all, *, bs, m):
    d_out = wt_all.shape[1]
    n = bs * m

    qkv = bimap_qkv(x_flat, w_cat, wt_all).reshape(3, n, d_out, d_out)   # free row-major view

    # TODO(synk): torch.svd / torch.linalg.eigh have no Pallas equivalent; one batched eigh over
    #             the stacked Q/K/V replaces all four decompositions of the reference (log Q,
    #             log K, log V and the final exp reuse these eigenbases).  eigh's default
    #             symmetrize_input=True absorbs the bimap's round-off asymmetry, so no explicit
    #             symmetrization pass is needed.
    s, u = jnp.linalg.eigh(qkv)                                          # (3, N, d), (3, N, d, d)

    out_flat = attention_logexp(u, s, batch=bs, num_p=m)                 # (N, d_out*d_out)
    return out_flat.reshape(n, d_out, d_out)


def gdatt_forward(x, wq, wk, wv):
    """Gdatt.forward.  x: (bs, m, d_in, d_in) SPD.  Returns (output (bs*m, d_out, d_out), shape)."""
    bs, m, d_in, _ = x.shape
    x_flat = x.reshape(bs * m, d_in, d_in).astype(jnp.float32)
    # TODO(synk): SPDTransform source was not provided; standard SPDNet BiMap (W^T X W with
    #             Stiefel W) semantics are used for q_trans / k_trans / v_trans.
    w_cat = jnp.concatenate([wq, wk, wv], axis=1).astype(jnp.float32)    # (d_in, 3*d_out)
    wt_all = jnp.swapaxes(
        jnp.stack([wq, wk, wv], axis=0).astype(jnp.float32), -1, -2)     # (3, d_out, d_in)
    output = _gdatt_core(x_flat, w_cat, wt_all, bs=bs, m=m)
    shape = [bs, m, -1]
    return output, shape


# ------------------------------------------------------------------ pure-JAX reference (correctness check)
def _sym_matrix_fn(t, fn):
    s, u = jnp.linalg.eigh(t)
    return jnp.einsum('...ia,...a,...ja->...ij', u, fn(s), u)


def gdatt_reference(x, wq, wk, wv):
    bs, m, d_in, _ = x.shape
    d = wq.shape[1]
    xf = x.reshape(bs * m, d_in, d_in).astype(jnp.float32)

    def bimap(w):
        return jnp.einsum('ia,nij,jb->nab', w, xf, w).reshape(bs, m, d, d)

    q, k, v = bimap(wq), bimap(wk), bimap(wv)
    log_fn = lambda s: jnp.log(jnp.abs(s))
    log_q, log_k, log_v = (_sym_matrix_fn(t, log_fn) for t in (q, k, v))

    diff = log_q[:, None] - log_k[:, :, None]              # (bs, i, j, d, d)
    energy = jnp.sum(diff * diff, axis=(-1, -2))           # atten_energy[b, i, j]
    prob = jax.nn.softmax(1.0 / (1.0 + jnp.log1p(energy)), axis=-2)
    w_row = jnp.sum(prob, axis=-2)                         # atten_prob row sums
    weighted = w_row[:, :, None, None] * log_v
    out = _sym_matrix_fn(weighted, jnp.exp)
    return out.reshape(bs * m, d, d)


# ------------------------------------------------------------------ main
if __name__ == "__main__":
    bs, m = 2, 4                  # batch size, SPD tokens per sample
    d_in, d_out = 16, 8           # Gdatt(in_embed_size=16, out_embed_size=8)

    key = jax.random.PRNGKey(0)
    kx, kq, kk, kv = jax.random.split(key, 4)

    # SPD inputs: G G^T / cols + 0.1 I  (covariance-like, eigenvalues >= 0.1)
    g = jax.random.normal(kx, (bs, m, d_in, 2 * d_in), jnp.float32)
    x = g @ jnp.swapaxes(g, -1, -2) / (2 * d_in) + 0.1 * jnp.eye(d_in, dtype=jnp.float32)

    def stiefel(k):               # SPDTransform weight: orthonormal columns (d_in, d_out)
        a = jax.random.normal(k, (d_in, d_in), jnp.float32)
        qm, _ = jnp.linalg.qr(a)
        return qm[:, :d_out].astype(jnp.float32)

    wq, wk, wv = stiefel(kq), stiefel(kk), stiefel(kv)

    output, shape = gdatt_forward(x, wq, wk, wv)
    output = jax.block_until_ready(output)

    assert output.shape == (bs * m, d_out, d_out), output.shape
    assert shape == [bs, m, -1], shape
    assert bool(jnp.all(jnp.isfinite(output)))

    ref = jax.block_until_ready(gdatt_reference(x, wq, wk, wv))
    max_err = float(jnp.max(jnp.abs(output - ref)))
    assert bool(jnp.allclose(output, ref, atol=5e-2, rtol=5e-2)), max_err

    print("KERNEL_OK")
</pallas_src>

<mosaic_0001>
module attributes {stable_mosaic.version = 11 : i64} {
  func.func @_bimap_qkv_kernel(%arg0: memref<8x16x16xf32, #tpu.memory_space<vmem>>, %arg1: memref<16x24xf32, #tpu.memory_space<vmem>>, %arg2: memref<3x8x16xf32, #tpu.memory_space<vmem>>, %arg3: memref<3x8x64xf32, #tpu.memory_space<vmem>>) attributes {dimension_semantics = [], scalar_prefetch = 0 : i64, scratch_operands = 0 : i64, tpu.core_type = #tpu.core_type<tc>} {
    %c0 = arith.constant 0 : index
    %c0_0 = arith.constant 0 : index
    %c0_1 = arith.constant 0 : index
    %0 = vector.load %arg0[%c0, %c0_0, %c0_1] : memref<8x16x16xf32, #tpu.memory_space<vmem>>, vector<8x16x16xf32>
    %1 = vector.shape_cast %0 : vector<8x16x16xf32> to vector<128x16xf32>
    %c0_2 = arith.constant 0 : index
    %c0_3 = arith.constant 0 : index
    %2 = vector.load %arg1[%c0_2, %c0_3] : memref<16x24xf32, #tpu.memory_space<vmem>>, vector<16x24xf32>
    %cst = arith.constant dense<0.000000e+00> : vector<128x24xf32>
    %3 = tpu.matmul %1, %2, %cst {dimension_numbers = #tpu.dot_dimension_numbers<[1], [0], [0], [1], [0, 0, 1, 1], [], []>} : vector<128x16xf32>, vector<16x24xf32>, vector<128x24xf32> -> vector<128x24xf32>
    %4 = vector.extract_strided_slice %3 {offsets = [0, 0], sizes = [128, 8], strides = [1, 1]} : vector<128x24xf32> to vector<128x8xf32>
    %5 = vector.shape_cast %4 : vector<128x8xf32> to vector<8x16x8xf32>
    %c0_4 = arith.constant 0 : index
    %c0_5 = arith.constant 0 : index
    %c0_6 = arith.constant 0 : index
    %6 = vector.load %arg2[%c0_4, %c0_5, %c0_6] : memref<3x8x16xf32, #tpu.memory_space<vmem>>, vector<1x8x16xf32>
    %7 = vector.shape_cast %6 : vector<1x8x16xf32> to vector<8x16xf32>
    %8 = vector.shape_cast %7 : vector<8x16xf32> to vector<1x8x16xf32>
    %9 = vector.broadcast %8 : vector<1x8x16xf32> to vector<8x8x16xf32>
    "tpu.trace_start"() <{level = 10 : i32, message = "nai,nik->nak"}> : () -> ()
    %cst_7 = arith.constant dense<0.000000e+00> : vector<8x8x8xf32>
    %10 = tpu.matmul %9, %5, %cst_7 {dimension_numbers = #tpu.dot_dimension_numbers<[2], [1], [1], [2], [0, 0, 0, 1, 1, 2], [0], [0]>} : vector<8x8x16xf32>, vector<8x16x8xf32>, vector<8x8x8xf32> -> vector<8x8x8xf32>
    "tpu.trace_stop"() : () -> ()
    %11 = vector.shape_cast %10 : vector<8x8x8xf32> to vector<8x64xf32>
    %c0_8 = arith.constant 0 : index
    %c0_9 = arith.constant 0 : index
    %c0_10 = arith.constant 0 : index
    %12 = vector.load %arg3[%c0_8, %c0_9, %c0_10] : memref<3x8x64xf32, #tpu.memory_space<vmem>>, vector<1x8x64xf32>
    %13 = vector.shape_cast %12 : vector<1x8x64xf32> to vector<8x64xf32>
    %14 = vector.shape_cast %11 : vector<8x64xf32> to vector<1x8x64xf32>
    tpu.vector_store %arg3[%c0_8, %c0_9, %c0_10], %14 {strides = array<i32>} : memref<3x8x64xf32, #tpu.memory_space<vmem>>, vector<1x8x64xf32>,
    %15 = vector.extract_strided_slice %3 {offsets = [0, 8], sizes = [128, 8], strides = [1, 1]} : vector<128x24xf32> to vector<128x8xf32>
    %16 = vector.shape_cast %15 : vector<128x8xf32> to vector<8x16x8xf32>
    %c1 = arith.constant 1 : index
    %c0_11 = arith.constant 0 : index
    %c0_12 = arith.constant 0 : index
    %17 = vector.load %arg2[%c1, %c0_11, %c0_12] : memref<3x8x16xf32, #tpu.memory_space<vmem>>, vector<1x8x16xf32>
    %18 = vector.shape_cast %17 : vector<1x8x16xf32> to vector<8x16xf32>
    %19 = vector.shape_cast %18 : vector<8x16xf32> to vector<1x8x16xf32>
    %20 = vector.broadcast %19 : vector<1x8x16xf32> to vector<8x8x16xf32>
    "tpu.trace_start"() <{level = 10 : i32, message = "nai,nik->nak"}> : () -> ()
    %cst_13 = arith.constant dense<0.000000e+00> : vector<8x8x8xf32>
    %21 = tpu.matmul %20, %16, %cst_13 {dimension_numbers = #tpu.dot_dimension_numbers<[2], [1], [1], [2], [0, 0, 0, 1, 1, 2], [0], [0]>} : vector<8x8x16xf32>, vector<8x16x8xf32>, vector<8x8x8xf32> -> vector<8x8x8xf32>
    "tpu.trace_stop"() : () -> ()
    %22 = vector.shape_cast %21 : vector<8x8x8xf32> to vector<8x64xf32>
    %c1_14 = arith.constant 1 : index
    %c0_15 = arith.constant 0 : index
    %c0_16 = arith.constant 0 : index
    %23 = vector.load %arg3[%c1_14, %c0_15, %c0_16] : memref<3x8x64xf32, #tpu.memory_space<vmem>>, vector<1x8x64xf32>
    %24 = vector.shape_cast %23 : vector<1x8x64xf32> to vector<8x64xf32>
    %25 = vector.shape_cast %22 : vector<8x64xf32> to vector<1x8x64xf32>
    tpu.vector_store %arg3[%c1_14, %c0_15, %c0_16], %25 {strides = array<i32>} : memref<3x8x64xf32, #tpu.memory_space<vmem>>, vector<1x8x64xf32>,
    %26 = vector.extract_strided_slice %3 {offsets = [0, 16], sizes = [128, 8], strides = [1, 1]} : vector<128x24xf32> to vector<128x8xf32>
    %27 = vector.shape_cast %26 : vector<128x8xf32> to vector<8x16x8xf32>
    %c2 = arith.constant 2 : index
    %c0_17 = arith.constant 0 : index
    %c0_18 = arith.constant 0 : index
    %28 = vector.load %arg2[%c2, %c0_17, %c0_18] : memref<3x8x16xf32, #tpu.memory_space<vmem>>, vector<1x8x16xf32>
    %29 = vector.shape_cast %28 : vector<1x8x16xf32> to vector<8x16xf32>
    %30 = vector.shape_cast %29 : vector<8x16xf32> to vector<1x8x16xf32>
    %31 = vector.broadcast %30 : vector<1x8x16xf32> to vector<8x8x16xf32>
    "tpu.trace_start"() <{level = 10 : i32, message = "nai,nik->nak"}> : () -> ()
    %cst_19 = arith.constant dense<0.000000e+00> : vector<8x8x8xf32>
    %32 = tpu.matmul %31, %27, %cst_19 {dimension_numbers = #tpu.dot_dimension_numbers<[2], [1], [1], [2], [0, 0, 0, 1, 1, 2], [0], [0]>} : vector<8x8x16xf32>, vector<8x16x8xf32>, vector<8x8x8xf32> -> vector<8x8x8xf32>
    "tpu.trace_stop"() : () -> ()
    %33 = vector.shape_cast %32 : vector<8x8x8xf32> to vector<8x64xf32>
    %c2_20 = arith.constant 2 : index
    %c0_21 = arith.constant 0 : index
    %c0_22 = arith.constant 0 : index
    %34 = vector.load %arg3[%c2_20, %c0_21, %c0_22] : memref<3x8x64xf32, #tpu.memory_space<vmem>>, vector<1x8x64xf32>
    %35 = vector.shape_cast %34 : vector<1x8x64xf32> to vector<8x64xf32>
    %36 = vector.shape_cast %33 : vector<8x64xf32> to vector<1x8x64xf32>
    tpu.vector_store %arg3[%c2_20, %c0_21, %c0_22], %36 {strides = array<i32>} : memref<3x8x64xf32, #tpu.memory_space<vmem>>, vector<1x8x64xf32>,
    return
  }
}

module attributes {stable_mosaic.version = 11 : i64} {
  func.func @_att_logexp_kernel(%arg0: memref<3x8x8x8xf32, #tpu.memory_space<vmem>>, %arg1: memref<3x8x8xf32, #tpu.memory_space<vmem>>, %arg2: memref<8x64xf32, #tpu.memory_space<vmem>>) attributes {dimension_semantics = [], scalar_prefetch = 0 : i64, scratch_operands = 0 : i64, tpu.core_type = #tpu.core_type<tc>} {
    %c0 = arith.constant 0 : index
    %c0_0 = arith.constant 0 : index
    %c0_1 = arith.constant 0 : index
    %0 = vector.load %arg1[%c0, %c0_0, %c0_1] : memref<3x8x8xf32, #tpu.memory_space<vmem>>, vector<3x8x8xf32>
    %1 = math.absf %0 : vector<3x8x8xf32>
    %2 = math.log %1 : vector<3x8x8xf32>
    %c0_2 = arith.constant 0 : index
    %c0_3 = arith.constant 0 : index
    %c0_4 = arith.constant 0 : index
    %c0_5 = arith.constant 0 : index
    %3 = vector.load %arg0[%c0_2, %c0_3, %c0_4, %c0_5] : memref<3x8x8x8xf32, #tpu.memory_space<vmem>>, vector<1x8x8x8xf32>
    %4 = vector.shape_cast %3 : vector<1x8x8x8xf32> to vector<8x8x8xf32>
    %5 = vector.extract_strided_slice %2 {offsets = [0, 0, 0], sizes = [1, 8, 8], strides = [1, 1, 1]} : vector<3x8x8xf32> to vector<1x8x8xf32>
    %6 = vector.shape_cast %5 : vector<1x8x8xf32> to vector<8x8xf32>
    %7 = vector.shape_cast %6 : vector<8x8xf32> to vector<8x1x8xf32>
    %8 = vector.broadcast %7 : vector<8x1x8xf32> to vector<8x8x8xf32>
    %9 = arith.mulf %4, %8 : vector<8x8x8xf32>
    "tpu.trace_start"() <{level = 10 : i32, message = "nia,nja->nij"}> : () -> ()
    %cst = arith.constant dense<0.000000e+00> : vector<8x8x8xf32>
    %10 = tpu.matmul %9, %4, %cst {dimension_numbers = #tpu.dot_dimension_numbers<[2], [2], [1], [1], [0, 0, 0, 1, 1, 1], [0], [0]>} : vector<8x8x8xf32>, vector<8x8x8xf32>, vector<8x8x8xf32> -> vector<8x8x8xf32>
    "tpu.trace_stop"() : () -> ()
    %11 = vector.shape_cast %10 : vector<8x8x8xf32> to vector<2x4x64xf32>
    %c1 = arith.constant 1 : index
    %c0_6 = arith.constant 0 : index
    %c0_7 = arith.constant 0 : index
    %c0_8 = arith.constant 0 : index
    %12 = vector.load %arg0[%c1, %c0_6, %c0_7, %c0_8] : memref<3x8x8x8xf32, #tpu.memory_space<vmem>>, vector<1x8x8x8xf32>
    %13 = vector.shape_cast %12 : vector<1x8x8x8xf32> to vector<8x8x8xf32>
    %14 = vector.extract_strided_slice %2 {offsets = [1, 0, 0], sizes = [1, 8, 8], strides = [1, 1, 1]} : vector<3x8x8xf32> to vector<1x8x8xf32>
    %15 = vector.shape_cast %14 : vector<1x8x8xf32> to vector<8x8xf32>
    %16 = vector.shape_cast %15 : vector<8x8xf32> to vector<8x1x8xf32>
    %17 = vector.broadcast %16 : vector<8x1x8xf32> to vector<8x8x8xf32>
    %18 = arith.mulf %13, %17 : vector<8x8x8xf32>
    "tpu.trace_start"() <{level = 10 : i32, message = "nia,nja->nij"}> : () -> ()
    %cst_9 = arith.constant dense<0.000000e+00> : vector<8x8x8xf32>
    %19 = tpu.matmul %18, %13, %cst_9 {dimension_numbers = #tpu.dot_dimension_numbers<[2], [2], [1], [1], [0, 0, 0, 1, 1, 1], [0], [0]>} : vector<8x8x8xf32>, vector<8x8x8xf32>, vector<8x8x8xf32> -> vector<8x8x8xf32>
    "tpu.trace_stop"() : () -> ()
    %20 = vector.shape_cast %19 : vector<8x8x8xf32> to vector<2x4x64xf32>
    %21 = arith.mulf %20, %20 : vector<2x4x64xf32>
    %cst_10 = arith.constant dense<0.000000e+00> : vector<2x4xf32>
    %22 = vector.multi_reduction <add>, %21, %cst_10 [2] : vector<2x4x64xf32> to vector<2x4xf32>
    %23 = vector.shape_cast %22 : vector<2x4xf32> to vector<2x4x1xf32>
    %24 = arith.mulf %11, %11 : vector<2x4x64xf32>
    %cst_11 = arith.constant dense<0.000000e+00> : vector<2x4xf32>
    %25 = vector.multi_reduction <add>, %24, %cst_11 [2] : vector<2x4x64xf32> to vector<2x4xf32>
    %26 = vector.shape_cast %25 : vector<2x4xf32> to vector<2x1x4xf32>
    "tpu.trace_start"() <{level = 10 : i32, message = "bid,bjd->bij"}> : () -> ()
    %cst_12 = arith.constant dense<0.000000e+00> : vector<2x4x4xf32>
    %27 = tpu.matmul %20, %11, %cst_12 {dimension_numbers = #tpu.dot_dimension_numbers<[2], [2], [1], [1], [0, 0, 0, 1, 1, 1], [0], [0]>} : vector<2x4x64xf32>, vector<2x4x64xf32>, vector<2x4x4xf32> -> vector<2x4x4xf32>
    "tpu.trace_stop"() : () -> ()
    %28 = vector.broadcast %23 : vector<2x4x1xf32> to vector<2x4x4xf32>
    %29 = vector.broadcast %26 : vector<2x1x4xf32> to vector<2x4x4xf32>
    %30 = arith.addf %28, %29 : vector<2x4x4xf32>
    %cst_13 = arith.constant 2.000000e+00 : f32
    %31 = vector.broadcast %cst_13 : f32 to vector<2x4x4xf32>
    %32 = arith.mulf %31, %27 : vector<2x4x4xf32>
    %33 = arith.subf %30, %32 : vector<2x4x4xf32>
    %cst_14 = arith.constant 0.000000e+00 : f32
    %34 = vector.broadcast %cst_14 : f32 to vector<2x4x4xf32>
    %35 = arith.maximumf %33, %34 : vector<2x4x4xf32>
    %36 = math.log1p %35 : vector<2x4x4xf32>
    %cst_15 = arith.constant 1.000000e+00 : f32
    %37 = vector.broadcast %cst_15 : f32 to vector<2x4x4xf32>
    %38 = arith.addf %37, %36 : vector<2x4x4xf32>
    %39 = tpu.reciprocal %38 {approx = true} : vector<2x4x4xf32> -> vector<2x4x4xf32>
    %cst_16 = arith.constant dense<0xFF800000> : vector<2x4xf32>
    %40 = vector.multi_reduction <maximumf>, %39, %cst_16 [1] : vector<2x4x4xf32> to vector<2x4xf32>
    %41 = vector.shape_cast %40 : vector<2x4xf32> to vector<2x1x4xf32>
    %42 = vector.broadcast %41 : vector<2x1x4xf32> to vector<2x4x4xf32>
    %43 = arith.subf %39, %42 : vector<2x4x4xf32>
    %44 = math.exp %43 : vector<2x4x4xf32>
    %cst_17 = arith.constant dense<0.000000e+00> : vector<2x4xf32>
    %45 = vector.multi_reduction <add>, %44, %cst_17 [1] : vector<2x4x4xf32> to vector<2x4xf32>
    %46 = vector.shape_cast %45 : vector<2x4xf32> to vector<2x1x4xf32>
    %47 = tpu.reciprocal %46 {approx = true} : vector<2x1x4xf32> -> vector<2x1x4xf32>
    %48 = vector.broadcast %47 : vector<2x1x4xf32> to vector<2x4x4xf32>
    %49 = arith.mulf %44, %48 : vector<2x4x4xf32>
    %cst_18 = arith.constant dense<0.000000e+00> : vector<2x4xf32>
    %50 = vector.multi_reduction <add>, %49, %cst_18 [1] : vector<2x4x4xf32> to vector<2x4xf32>
    %51 = vector.extract_strided_slice %2 {offsets = [2, 0, 0], sizes = [1, 8, 8], strides = [1, 1, 1]} : vector<3x8x8xf32> to vector<1x8x8xf32>
    %52 = vector.shape_cast %51 : vector<1x8x8xf32> to vector<8x8xf32>
    %53 = vector.shape_cast %52 : vector<8x8xf32> to vector<2x4x8xf32>
    %54 = vector.shape_cast %50 : vector<2x4xf32> to vector<2x4x1xf32>
    %55 = vector.broadcast %54 : vector<2x4x1xf32> to vector<2x4x8xf32>
    %56 = arith.mulf %55, %53 : vector<2x4x8xf32>
    %57 = math.exp %56 : vector<2x4x8xf32>
    %c2 = arith.constant 2 : index
    %c0_19 = arith.constant 0 : index
    %c0_20 = arith.constant 0 : index
    %c0_21 = arith.constant 0 : index
    %58 = vector.load %arg0[%c2, %c0_19, %c0_20, %c0_21] : memref<3x8x8x8xf32, #tpu.memory_space<vmem>>, vector<1x8x8x8xf32>
    %59 = vector.shape_cast %58 : vector<1x8x8x8xf32> to vector<8x8x8xf32>
    %60 = vector.shape_cast %57 : vector<2x4x8xf32> to vector<8x8xf32>
    %61 = vector.shape_cast %60 : vector<8x8xf32> to vector<8x1x8xf32>
    %62 = vector.broadcast %61 : vector<8x1x8xf32> to vector<8x8x8xf32>
    %63 = arith.mulf %59, %62 : vector<8x8x8xf32>
    "tpu.trace_start"() <{level = 10 : i32, message = "nia,nja->nij"}> : () -> ()
    %cst_22 = arith.constant dense<0.000000e+00> : vector<8x8x8xf32>
    %64 = tpu.matmul %63, %59, %cst_22 {dimension_numbers = #tpu.dot_dimension_numbers<[2], [2], [1], [1], [0, 0, 0, 1, 1, 1], [0], [0]>} : vector<8x8x8xf32>, vector<8x8x8xf32>, vector<8x8x8xf32> -> vector<8x8x8xf32>
    "tpu.trace_stop"() : () -> ()
    %65 = vector.shape_cast %64 : vector<8x8x8xf32> to vector<8x64xf32>
    %c0_23 = arith.constant 0 : index
    %c0_24 = arith.constant 0 : index
    %66 = vector.load %arg2[%c0_23, %c0_24] : memref<8x64xf32, #tpu.memory_space<vmem>>, vector<8x64xf32>
    tpu.vector_store %arg2[%c0_23, %c0_24], %65 {strides = array<i32>} : memref<8x64xf32, #tpu.memory_space<vmem>>, vector<8x64xf32>,
    return
  }
}

</mosaic_0001>

<bundles_post_ra>
// kernel: custom-call.2
= control target key start
LH: loop header
LB: loop body
LE: loop exit
PB: predicated region body
PF: predicated region fallthrough
CT: control target
= control target key end

     0   :  { %s2259_s0 = inlined_call_operand.vmem [shape: f32[3,8,4,4], index: 0, kind: input, shape index: {}]   ;;  %s2260_s1 = inlined_call_operand.vmem [shape: f32[3,8,4,4], index: 1, kind: input, shape index: {}]   ;;  %s2261_s2 = inlined_call_operand.vmem [shape: f32[3,8,4,4], index: 2, kind: input, shape index: {}]   ;;  %s2262_s3 = inlined_call_operand.vmem [shape: f32[3,8,4,4], index: 3, kind: input, shape index: {}]   ;;  %s2263_s4 = inlined_call_operand.vmem [shape: f32[3,8,4], index: 4, kind: output, shape index: {0}]   ;;  %s2264_s5 = inlined_call_operand.vmem [shape: f32[3,8,4], index: 5, kind: output, shape index: {1}]   ;;  %s2265_s6 = inlined_call_operand.vmem [shape: f32[3,8,4,4], index: 6, kind: output, shape index: {2}]   ;;  %s2266_s7 = inlined_call_operand.vmem [shape: f32[3,8,4,4], index: 7, kind: output, shape index: {3}]   ;;  %s2267_s8 = inlined_call_operand.vmem [shape: f32[3,8,4,4], index: 8, kind: output, shape index: {4}]   ;;  %s2268_s9 = inlined_call_operand.vmem [shape: f32[3,8,4,4], index: 9, kind: output, shape index: {5}]  }
   0x1   :  { %2274 = sst [smem:[#allocation36_spill]] %s2268_s9 }
   0x2   :  { %s1888_s30 = smov 0   ;;  %s1890_s10 = smov 0  }
   0x3   :  { %s1892_s11 = smov 0   ;;  %s1894_s12 = smov 0  }
   0x4   :  { %s1896_s13 = smov 0   ;;  %s1898_s14 = smov 0  }
   0x5   :  { %s1900_s15 = smov 0  }
   0x6 LB: > { %2275 = sst [smem:[#allocation31_spill]] %s1805_s10  ;;  %s25_s16 = sadd.s32 1, %s1817_s13  ;;  %s1825_s15 = sphi %s1900_s15, %s16_s15   ;;  %s1821_s14 = sphi %s1898_s14, %s2298_s14   ;;  %s1817_s13 = sphi %s1896_s13, %s2300_s13   ;;  %s1813_s12 = sphi %s1894_s12, %s2296_s12   ;;  %s1809_s11 = sphi %s1892_s11, %s2299_s11   ;;  %s1805_s10 = sphi %s1890_s10, %s2295_s10   ;;  %s1801_s30 = sphi %s1888_s30, %s2294_s30  }
   0x7   : > { %2276 = sst [smem:[#allocation32_spill]] %s1821_s14  ;;  %p26_p0 = scmp.ge.s32.totalorder %s25_s16, 8 }
   0x8   : > { %s28_s17 = sadd.s32 1, %s1821_s14  ;;  %s2269_s18 = sadd.s32 4294967295, %s1825_s15  }
   0x9   : > { %s32_s19 = sshrl.u32 %s1817_s13, 3  ;;  %s2302_s16 = smov (%p26_p0, %s25_s16), 0 }
   0xa   : > { %2277 = sst [smem:[#allocation33_spill]] %s2302_s16  ;;  %s2304_s17 = smov (!%p26_p0, %s28_s17), %s1821_s14 }
   0xb   : > { %s33_s20 = sshrl.u32 %s2302_s16, 3  ;;  %p49_p1 = scmp.ne.s32.totalorder %s1805_s10, %s1801_s30 }
   0xc   : > { %p30_p2 = scmp.ge.s32.totalorder %s2304_s17, 3  ;;  %s35_s21 = ssub.s32 %s32_s19, %s33_s20 }
   0xd   : > { %p50_p3 = scmp.eq.s32.totalorder %s2269_s18, 23  ;;  %s39_s25 = sadd.s32 1, %s1805_s10 }
   0xe   : > { %s2306_s17 = smov (%p30_p2, %s2304_s17), 0  ;;  %p1614_p6 = scmp.ge.s32.totalorder %s1825_s15, 24 }
   0xf   : > { %2278 = sst [smem:[#allocation34_spill]] %s2306_s17  ;;  %p1937_p4 = por %p50_p3, %p49_p1 }
  0x10   : > { %s34_s23 = ssub.s32 %s1821_s14, %s2306_s17  ;;  %s104_s27 = sand.u32 (!%p1614_p6), 1, %s1825_s15  }
  0x11   : > { %s36_s24 = sor.u32 %s35_s21, %s34_s23  ;;  %s1616_s28 = sshll.u32 (!%p1614_p6), %s1821_s14, 3 }
  0x12   : > { %p37_p5 = scmp.eq.s32.totalorder %s36_s24, 0  ;;  %102 = sbr.rel (%p1614_p6) target bundleno = 28 (0x1c), region = 16 }
  0x13   : > { %s1615_s29 = sshll.u32 (!%p1614_p6), %s104_s27, 2  ;;  %s108_s19 = sadd.s32 (!%p1614_p6), %s1817_s13, %s1616_s28 }
  0x14   : > { %s1945_s26 = scalar_select %p37_p5, %s1805_s10, %s39_s25  }
  0x15   : > { %s1617_s20 = sshll.u32 (!%p1614_p6), %s108_s19, 2  ;;  %s106_s25 = scalar_lea.vmem (!%p1614_p6), [#allocation1], %s1615_s29 }
  0x16   : > { %2280 = sst [smem:[#allocation35_spill]] %s1945_s26  ;;  %s110_s17 = scalar_lea.vmem (!%p1614_p6), %s2259_s0, %s1617_s20 }
  0x17   : > { %v127_v0 = vld [vmem:[%s110_s17] sm:$0xf]  ;;  %s151_s24 = scalar_lea.vmem %s2260_s1, %s1617_s20  ;;  %s192_s9 = scalar_lea.vmem %s2261_s2, %s1617_s20 }
  0x18   : > { %128 = vst [vmem:[%s106_s25] sm:$0xf] %v127_v0  ;;  %v168_v1 = vld [vmem:[%s151_s24] sm:$0xf]  ;;  %s147_s14 = scalar_lea.vmem [#allocation3], %s1615_s29  ;;  %s233_s16 = scalar_lea.vmem %s2262_s3, %s1617_s20 }
  0x19   : > { %169 = vst [vmem:[%s147_s14] sm:$0xf] %v168_v1  ;;  %v209_v2 = vld [vmem:[%s192_s9] sm:$0xf]  ;;  %s188_s18 = scalar_lea.vmem [#allocation5], %s1615_s29  ;;  %s229_s17 = scalar_lea.vmem [#allocation7], %s1615_s29 }
  0x1a   : > { %210 = vst [vmem:[%s188_s18] sm:$0xf] %v209_v2  ;;  %v250_v3 = vld [vmem:[%s233_s16] sm:$0xf] }
  0x1b   : > { %251 = vst [vmem:[%s229_s17] sm:$0xf] %v250_v3 }
  0x1c PF: > { %p1627_p7 = scmp.ge.s32.totalorder %s1825_s15, 1  ;;  %p268_p8 = scmp.lt.s32.totalorder %s1825_s15, 25 }
  0x1e   : > { %p269_p9 = pnand %p1627_p7, %p268_p8 }
  0x20   : > { %272 = sbr.rel (%p269_p9) target bundleno = 959 (0x3bf), region = 140 }
  0x25   : > { %s2281_s10 = sadd.s32 4294967295, %s1825_s15   ;;  %s309_s14 = sand.u32 1, %s1801_s30   ;;  %v369_v4 = vlaneseq  ;;  %v1835_v5 = vmov 0.0  }
  0x26   : > { %s291_s9 = sand.u32 1, %s2281_s10   ;;  %s1970_s29 = sshll.u32 %s309_s14, 3  ;;  %364 = vst [vmem:[#allocation10] sm:$0xff] %v1835_v5 }
  0x27   : > { %s1968_s26 = sshll.u32 %s291_s9, 2  ;;  %365 = vst [vmem:[#allocation12] sm:$0xff] %v1835_v5  ;;  %v1972_v6 = vand.u32 127, %v369_v4  ;;  %v1974_v7 = vshrl.u32 %v369_v4, 7  ;;  %s352_s23 = smov [#allocation18] }
  0x28   : > { %s293_s19 = scalar_lea.vmem [#allocation1], %s1968_s26  ;;  %s297_s20 = scalar_lea.vmem [#allocation3], %s1968_s26  ;;  %366 = vst [vmem:[#allocation14] sm:$0xff] %v1835_v5 }
  0x29   : > { %v336_v8 = vld [vmem:[%s293_s19] sm:$0xf]  ;;  %v340_v9 = vld [vmem:[%s297_s20] sm:$0xf]  ;;  %s301_s30 = scalar_lea.vmem [#allocation5], %s1968_s26  ;;  %s305_s21 = scalar_lea.vmem [#allocation7], %s1968_s26  ;;  %v371_v6 = vmov %v1972_v6  ;;  %v374_v7 = vmov %v1974_v7 }
  0x2a   : > { %337 = vst [vmem:[#allocation0] sm:$0xf] %v336_v8  ;;  %v344_v10 = vld [vmem:[%s301_s30] sm:$0xf]  ;;  %v348_v11 = vld [vmem:[%s305_s21] sm:$0xf]  ;;  %vm378_vm0 = vcmp.eq.s32.totalorder %v374_v7, %v371_v6  ;;  %v384_v6 = vmov %v1972_v6  ;;  %v387_v7 = vmov %v1974_v7 }
  0x2b   : > { %341 = vst [vmem:[#allocation2] sm:$0xf] %v340_v9  ;;  %s368_s24 = smov [#allocation10]  ;;  %s355_s25 = smov [#allocation19]  ;;  %vm391_vm1 = vcmp.eq.s32.totalorder %v387_v7, %v384_v6  ;;  %vm1491_vm2 = vcmp.lt.s32.totalorder %v1972_v6, 4  ;;  %v1483_v6 = vmov %v1972_v6  ;;  %v1486_v7 = vmov %v1974_v7 }
  0x2c   : > { %345 = vst [vmem:[#allocation4] sm:$0xf] %v344_v10  ;;  %s358_s27 = smov [#allocation20]  ;;  %s361_s28 = smov [#allocation21]  ;;  %v1500_v6 = vmov %v1972_v6  ;;  %v1503_v7 = vmov %v1974_v7  ;;  %vm1496_vm3 = vcmp.eq.s32.totalorder %v1486_v7, %v1483_v6 }
  0x2d   : > { %349 = vst [vmem:[#allocation6] sm:$0xf] %v348_v11  ;;  %v375_v12 = vld [vmem:[%s368_s24] sm:$0xf]  ;;  %s381_s16 = smov [#allocation16]  ;;  %s321_s10 = scalar_lea.vmem [#allocation11], %s1968_s26  ;;  %v1517_v6 = vmov %v1972_v6  ;;  %v1520_v7 = vmov %v1974_v7 }
  0x2e   : > { %367 = vst [vmem:[#allocation16] sm:$0xff] %v1835_v5  ;;  %v379_v16 = vsel %vm378_vm0, 1.0, %v375_v12  ;;  %s1487_s20 = smov [#allocation18]  ;;  %s1504_s30 = smov [#allocation19]  ;;  %v1534_v6 = vmov %v1972_v6  ;;  %v1537_v7 = vmov %v1974_v7 }
  0x2f   : > { %380 = vst [vmem:[%s368_s24] sm:$0xf] %v379_v16  ;;  %s1521_s21 = smov [#allocation20]  ;;  %vm1547_vm4 = vcmp.eq.s32.totalorder %v1537_v7, %v1534_v6 }
  0x31   : > { %v353_v13 = vld [vmem:[#allocation0] sm:$0xff] }
  0x32   : > { %354 = vst [vmem:[%s352_s23] sm:$0xff] %v353_v13  ;;  %v356_v14 = vld [vmem:[#allocation2] sm:$0xff]  ;;  %s1538_s23 = smov [#allocation21] }
  0x33   : > { %357 = vst [vmem:[%s355_s25] sm:$0xff] %v356_v14  ;;  %v359_v15 = vld [vmem:[#allocation4] sm:$0xff] }
  0x34   : > { %360 = vst [vmem:[%s358_s27] sm:$0xff] %v359_v15  ;;  %v362_v17 = vld [vmem:[#allocation6] sm:$0xff] }
  0x35   : > { %363 = vst [vmem:[%s361_s28] sm:$0xff] %v362_v17  ;;  %v388_v18 = vld [vmem:[%s381_s16] sm:$0xf] }
  0x36   : > { %v392_v19 = vsel %vm391_vm1, 1.0, %v388_v18 }
  0x37   : > { %393 = vst [vmem:[%s381_s16] sm:$0xf] %v392_v19 }
  0x39   : > { %v1493_v20 = vld [vmem:[%s1487_s20] sm:$0xf] }
  0x3a   : > { %v1510_v21 = vld [vmem:[%s1504_s30] sm:$0xf]  ;;  %v1494_v22 = vsel %vm1491_vm2, %v1493_v20, 0.0 }
  0x3b   : > { %v1511_v23 = vsel %vm1491_vm2, %v1510_v21, 0.0  ;;  %v1527_v24 = vld [vmem:[%s1521_s21] sm:$0xf]  ;;  %v1495_v26 = vmul.f32 %v1494_v22, %v1494_v22 }
  0x3c   : > { %v1544_v25 = vld [vmem:[%s1538_s23] sm:$0xf]  ;;  %v1512_v27 = vmul.f32 %v1511_v23, %v1511_v23  ;;  %v1528_v28 = vsel %vm1491_vm2, %v1527_v24, 0.0 }
  0x3d   : > { %v1545_v29 = vsel %vm1491_vm2, %v1544_v25, 0.0  ;;  %v1529_v30 = vmul.f32 %v1528_v28, %v1528_v28  ;;  %v1497_v33 = vsel %vm1496_vm3, 0.0, %v1495_v26 }
  0x3e   : > { %v1514_v31 = vadd.f32 %v1512_v27, %v1495_v26  ;;  %v1546_v32 = vmul.f32 %v1545_v29, %v1545_v29  ;;  %v1513_v35 = vadd.f32 %v1512_v27, %v1497_v33 }
  0x40   : > { %v1531_v34 = vadd.f32 %v1529_v30, %v1514_v31  ;;  %v1530_v37 = vadd.f32 %v1529_v30, %v1513_v35  ;;  %v1548_v38 = vsel %vm1547_vm4, 0.0, %v1546_v32 }
  0x42   : > { %v1550_v36 = vadd.f32 %v1546_v32, %v1531_v34  ;;  %v1549_v39 = vadd.f32 %v1548_v38, %v1530_v37 }
  0x44   : > { %1551 = vadd.xlane.f32.xlu0 %v1550_v36 }
  0x4c   : > { %1559 = vadd.xlane.f32.xlu0 %v1549_v39 }
  0xb7   : > { %v1552_v40 = vpop.xlane.xlu0 %1551 }
  0xb8   : > { %v1553_v41 = vrot.slane %v1552_v40, 4 }
  0xba   : > { %v1554_v42 = vadd.f32 %v1553_v41, %v1552_v40 }
  0xbc   : > { %v1555_v43 = vrot.slane %v1554_v42, 2 }
  0xbe   : > { %v1556_v47 = vadd.f32 %v1555_v43, %v1554_v42 }
  0xbf   : > { %v1560_v44 = vpop.xlane.xlu0 %1559 }
  0xc0   : > { %v1561_v45 = vrot.slane %v1560_v44, 4  ;;  %v1557_v50 = vrot.slane %v1556_v47, 1 }
  0xc2   : > { %v1562_v46 = vadd.f32 %v1561_v45, %v1560_v44  ;;  %v1558_v53 = vadd.f32 %v1557_v50, %v1556_v47 }
  0xc4   : > { %v1563_v48 = vrot.slane %v1562_v46, 2 }
  0xc6   : > { %v1564_v49 = vadd.f32 %v1563_v48, %v1562_v46 }
  0xc8   : > { %v1565_v51 = vrot.slane %v1564_v49, 1 }
  0xca   : > { %v1566_v52 = vadd.f32 %v1565_v51, %v1564_v49 }
  0xcc   : > { %1672 = vpush %v1566_v52 }
  0xcd   : > { %1674 = vpush %v1558_v53 }
  0xfd   : > { %s1673_s24 = spop %1672 }
  0xfe   : > { %s1675_s25 = spop %1674 }
  0xff   : > { %s1569_s27 = smul.f32 1e-10, %s1675_s25 }
 0x101   : > { %p1570_p10 = scmp.le.f32.partialorder %s1673_s24, %s1569_s27 }
 0x102   : > { %s2007_s28 = smov (!%p1570_p10), 0  }
 0x103   : > { %1573 = sbr.rel (%p1570_p10) target bundleno = 917 (0x395), region = 475 }
 0x108 LB: >> { %s2012_s16 = smov 0   ;;  %s1829_s28 = sphi %s2007_s28, %s2282_s28  }
 0x109 LB: >>> { %s498_s20 = smov [#allocation18]  ;;  %v502_v6 = vmov %v1972_v6  ;;  %v505_v7 = vmov %v1974_v7  ;;  %s518_s30 = smov [#allocation19]  ;;  %s1833_s16 = sphi %s2012_s16, %s497_s16  }
 0x10a   : >>> { %v522_v6 = vmov %v1972_v6  ;;  %v525_v7 = vmov %v1974_v7  ;;  %v506_v54 = vld [vmem:[%s498_s20] sm:$0xf]  ;;  %vm509_vm5 = vcmp.eq.s32.totalorder %v505_v7, %v502_v6  ;;  %s538_s21 = smov [#allocation21]  ;;  %s499_s23 = smov [#allocation22] }
 0x10b   : >>> { %vm529_vm6 = vcmp.eq.s32.totalorder %v525_v7, %v522_v6  ;;  %v542_v6 = vmov %v1972_v6  ;;  %v545_v7 = vmov %v1974_v7  ;;  %v510_v55 = vsel %vm509_vm5, %v506_v54, 0.0  ;;  %v526_v56 = vld [vmem:[%s518_s30] sm:$0xf]  ;;  %s519_s24 = smov [#allocation23]  ;;  %s539_s25 = smov [#allocation24] }
 0x10c   : >>> { %vm549_vm7 = vcmp.eq.s32.totalorder %v545_v7, %v542_v6  ;;  %v511_v57 = vrot.slane %v510_v55, 4  ;;  %v530_v58 = vsel %vm529_vm6, %v526_v56, 0.0  ;;  %v546_v59 = vld [vmem:[%s538_s21] sm:$0xf]  ;;  %s562_s27 = smov [#allocation23]  ;;  %s560_s20 = smov [#allocation22]  ;;  %v651_v6 = vmov %v1972_v6 }
 0x10d   : >>> { %v531_v60 = vrot.slane %v530_v58, 4  ;;  %v550_v61 = vsel %vm549_vm7, %v546_v59, 0.0  ;;  %s564_s30 = smov [#allocation24]  ;;  %s639_s21 = smov [#allocation25]  ;;  %v654_v7 = vmov %v1974_v7 }
 0x10e   : >>> { %v512_v62 = vadd.f32 %v511_v57, %v510_v55  ;;  %v551_v63 = vrot.slane %v550_v61, 4  ;;  %s2038_s17 = smov [#allocation10]  ;;  %s2040_s18 = smov [#allocation12] }
 0x10f   : >>> { %v532_v0 = vadd.f32 %v531_v60, %v530_v58  ;;  %s2045_s19 = smov [#allocation14]  ;;  %s903_s14 = smov [#allocation30] }
 0x110   : >>> { %v513_v1 = vrot.slane %v512_v62, 2  ;;  %v552_v2 = vadd.f32 %v551_v63, %v550_v61  ;;  %s2048_s9 = smov [#allocation16]  ;;  %s497_s16 = sadd.s32 1, %s1833_s16  }
 0x111   : >>> { %v533_v3 = vrot.slane %v532_v0, 2  ;;  %p494_p11 = scmp.ge.s32.totalorder %s497_s16, 7  }
 0x112   : >>> { %v514_v4 = vadd.f32 %v513_v1, %v512_v62  ;;  %v553_v5 = vrot.slane %v552_v2, 2 }
 0x113   : >>> { %v534_v8 = vadd.f32 %v533_v3, %v532_v0 }
 0x114   : >>> { %v515_v9 = vrot.slane %v514_v4, 1  ;;  %v554_v10 = vadd.f32 %v553_v5, %v552_v2 }
 0x115   : >>> { %v535_v11 = vrot.slane %v534_v8, 1 }
 0x116   : >>> { %v516_v12 = vadd.f32 %v515_v9, %v514_v4  ;;  %v555_v13 = vrot.slane %v554_v10, 1 }
 0x117   : >>> { %v536_v14 = vadd.f32 %v535_v11, %v534_v8 }
 0x118   : >>> { %517 = vst [vmem:[%s499_s23] sm:$0x1] %v516_v12  ;;  %v556_v15 = vadd.f32 %v555_v13, %v554_v10  ;;  %s641_s23 = smov [#allocation26] }
 0x119   : >>> { %537 = vst [vmem:[%s519_s24] sm:$0x1] %v536_v14  ;;  %s558_s24 = smov [#allocation27] }
 0x11a   : >>> { %557 = vst [vmem:[%s539_s25] sm:$0x1] %v556_v15  ;;  %s559_s25 = smov [#allocation28]  ;;  %s643_s24 = smov %s558_s24 }
 0x11b   : >>> { %s645_s25 = smov %s559_s25 }
 0x11f   : >>> { %v561_v23 = vld [vmem:[%s560_s20] sm:$0xff]  ;;  %s662_s20 = smov [#allocation28] }
 0x120   : >>> { %v2023_v16 = vld [vmem:[%s562_s27] sm:$0xff]  ;;  %v615_v47 = vand.u32 2147483647, %v561_v23  ;;  %s647_s27 = smov [#allocation27] }
 0x121   : >>> { %v567_v17 = vmul.f32 2.0, %v2023_v16  ;;  %v565_v24 = vld [vmem:[%s564_s30] sm:$0xff]  ;;  %v616_v55 = vand.u32 2147483647, %v2023_v16  ;;  %s660_s30 = smov [#allocation29] }
 0x122   : >>> { %v566_v27 = vsub.f32 %v565_v24, %v561_v23  ;;  %v617_v48 = vand.u32 2147483647, %v565_v24 }
 0x123   : >>> { %1755 = vrcp.f32 %v567_v17  ;;  %v579_v20 = vand.u32 2147483648, %v567_v17  ;;  %vm573_vm8 = vweird.f32 %v567_v17  ;;  %v577_v22 = vand.u32 2147483647, %v567_v17 }
 0x124   : >>> { %v618_v50 = vmin.f32 %v615_v47, %v617_v48 }
 0x125   : >>> { %v580_v26 = vor.u32 1.1754944e-38, %v579_v20  ;;  %vm578_vm11 = vcmp.eq.f32.partialorder %v577_v22, 8.507059e+37 }
 0x126   : >>> { %v619_v56 = vmul.f32 1.1920929e-08, %v618_v50 }
 0x128   : >>> { %vm620_vm4 = vcmp.le.f32.partialorder %v616_v55, %v619_v56 }
 0x129   : >>> { %v1756_v18 = vpop.eup %1755 }
 0x12a   : >>> { %v569_v19 = vmul.f32 %v1756_v18, %v567_v17  ;;  %vm574_vm9 = vweird.f32 %v1756_v18 }
 0x12b   : >>> { %vm575_vm10 = vmor %vm573_vm8, %vm574_vm9  ;;  %vm656_vm8 = vcmp.eq.s32.totalorder %v654_v7, %v651_v6  ;;  %v666_v6 = vmov %v1972_v6  ;;  %v669_v7 = vmov %v1974_v7 }
 0x12c   : >>> { %v570_v21 = vsub.f32 1.0, %v569_v19  ;;  %vm671_vm9 = vcmp.eq.s32.totalorder %v669_v7, %v666_v6  ;;  %v737_v6 = vmov %v1972_v6 }
 0x12d   : >>> { %v778_v6 = vmov %v1972_v6 }
 0x12e   : >>> { %v571_v25 = vmul.f32 %v1756_v18, %v570_v21  ;;  %v764_v6 = vmov %v1972_v6 }
 0x130   : >>> { %v572_v28 = vadd.f32 %v1756_v18, %v571_v25 }
 0x132   : >>> { %v576_v29 = vsel %vm575_vm10, %v1756_v18, %v572_v28  ;;  %v911_v28 = vld [vmem:[%s2045_s19] sm:$0xf]  ;;  %vm861_vm10 = vcmp.eq.s32.totalorder %v1974_v7, 0 }
 0x133   : >>> { %v581_v30 = vsel %vm578_vm11, %v580_v26, %v576_v29  ;;  %vm873_vm11 = vcmp.eq.s32.totalorder %v1974_v7, 3  ;;  %v740_v7 = vmov %v1974_v7 }
 0x134   : >>> { %v582_v31 = vmul.f32 %v581_v30, %v566_v27  ;;  %v781_v7 = vmov %v1974_v7 }
 0x135   : >>> { %v767_v7 = vmov %v1974_v7 }
 0x136   : >>> { %v584_v32 = vmul.f32 %v582_v31, %v582_v31  ;;  %vm583_vm14 = vcmp.ge.f32.partialorder %v582_v31, 0.0 }
 0x138   : >>> { %v585_v33 = vadd.f32 1.0, %v584_v32 }
 0x13a   : >>> { %1757 = vrsqrt.f32 %v585_v33  ;;  %vm593_vm12 = vcmp.eq.f32.partialorder %v585_v33, inf  ;;  %v596_v40 = vand.u32 2147483648, %v585_v33  ;;  %vm595_vm13 = vcmp.eq.f32.partialorder %v585_v33, 0.0 }
 0x140   : >>> { %v1758_v34 = vpop.eup %1757 }
 0x141   : >>> { %v587_v35 = vmul.f32 %v1758_v34, %v585_v33 }
 0x143   : >>> { %v588_v36 = vmul.f32 %v1758_v34, %v587_v35 }
 0x145   : >>> { %v589_v37 = vmul.f32 0.5, %v588_v36 }
 0x147   : >>> { %v590_v38 = vsub.f32 1.5, %v589_v37 }
 0x149   : >>> { %v591_v39 = vmul.f32 %v1758_v34, %v590_v38 }
 0x14b   : >>> { %v592_v41 = vmul.f32 %v591_v39, %v585_v33 }
 0x14d   : >>> { %v594_v42 = vsel %vm593_vm12, %v585_v33, %v592_v41  ;;  %v912_v33 = vld [vmem:[%s2048_s9] sm:$0xf]  ;;  %vm745_vm12 = vcmp.eq.s32.totalorder %v740_v7, %v737_v6  ;;  %v751_v6 = vmov %v1972_v6  ;;  %v754_v7 = vmov %v1974_v7 }
 0x14e   : >>> { %v597_v43 = vsel %vm595_vm13, %v596_v40, %v594_v42  ;;  %vm786_vm13 = vcmp.eq.s32.totalorder %v781_v7, %v778_v6 }
 0x14f   : >>> { %v598_v44 = vxor.u32 2147483648, %v597_v43 }
 0x151   : >>> { %v599_v45 = vsel %vm583_vm14, %v597_v43, %v598_v44  ;;  %vm771_vm14 = vcmp.eq.s32.totalorder %v767_v7, %v764_v6 }
 0x152   : >>> { %v600_v46 = vadd.f32 %v599_v45, %v582_v31 }
 0x154   : >>> { %1759 = vrcp.f32 %v600_v46  ;;  %v612_v52 = vand.u32 2147483648, %v600_v46  ;;  %vm606_vm15 = vweird.f32 %v600_v46  ;;  %v610_v54 = vand.u32 2147483647, %v600_v46 }
 0x156   : >>> { %v613_v58 = vor.u32 1.1754944e-38, %v612_v52  ;;  %vm611_vm3 = vcmp.eq.f32.partialorder %v610_v54, 8.507059e+37 }
 0x15a   : >>> { %v1760_v49 = vpop.eup %1759 }
 0x15b   : >>> { %v602_v51 = vmul.f32 %v1760_v49, %v600_v46  ;;  %vm607_vm0 = vweird.f32 %v1760_v49 }
 0x15c   : >>> { %vm608_vm1 = vmor %vm606_vm15, %vm607_vm0  ;;  %vm758_vm15 = vcmp.eq.s32.totalorder %v754_v7, %v751_v6  ;;  %vm817_vm0 = vcmp.eq.s32.totalorder %v1972_v6, 3  ;;  %v401_v7 = vmov (%p494_p11), %v1974_v7 }
 0x15d   : >>> { %v603_v53 = vsub.f32 1.0, %v602_v51 }
 0x15f   : >>> { %v604_v57 = vmul.f32 %v1760_v49, %v603_v53 }
 0x161   : >>> { %v605_v59 = vadd.f32 %v1760_v49, %v604_v57 }
 0x163   : >>> { %v609_v60 = vsel %vm608_vm1, %v1760_v49, %v605_v59  ;;  %vm800_vm1 = vcmp.eq.s32.totalorder %v1972_v6, 0 }
 0x164   : >>> { %v614_v61 = vsel %vm611_vm3, %v613_v58, %v609_v60  ;;  %vm804_vm3 = vcmp.eq.s32.totalorder %v1972_v6, 1  ;;  %v398_v6 = vmov (%p494_p11), %v1972_v6 }
 0x165   : >>> { %v621_v62 = vsel %vm620_vm4, 0.0, %v614_v61  ;;  %vm413_vm4 = vcmp.eq.s32.totalorder (%p494_p11), %v401_v7, %v398_v6  ;;  %v417_v6 = vmov (%p494_p11), %v1972_v6  ;;  %v420_v7 = vmov (%p494_p11), %v1974_v7 }
 0x166   : >>> { %v622_v63 = vmul.f32 %v621_v62, %v621_v62  ;;  %v635_v0 = vmul.f32 %v621_v62, %v2023_v16  ;;  %v434_v6 = vmov (%p494_p11), %v1972_v6  ;;  %v437_v7 = vmov (%p494_p11), %v1974_v7 }
 0x167   : >> { %v451_v6 = vmov (%p494_p11), %v1972_v6  ;;  %v454_v7 = vmov (%p494_p11), %v1974_v7 }
 0x168   : >>> { %v623_v1 = vadd.f32 1.0, %v622_v63  ;;  %v636_v2 = vsub.f32 %v561_v23, %v635_v0  ;;  %v638_v3 = vadd.f32 %v635_v0, %v565_v24  ;;  %v909_v23 = vld [vmem:[%s2038_s17] sm:$0xf] }
 0x169   : >>> { %v910_v24 = vld [vmem:[%s2040_s18] sm:$0xf] }
 0x16a   : >>> { %1761 = vrsqrt.f32 %v623_v1  ;;  %640 = vst [vmem:[%s639_s21] sm:$0xff] %v636_v2  ;;  %vm630_vm5 = vweird.f32 %v623_v1  ;;  %s675_s21 = smov [#allocation30] }
 0x16b   : >>> { %642 = vst [vmem:[%s641_s23] sm:$0xff] %v638_v3  ;;  %s677_s23 = smov [#allocation29] }
 0x170   : >>> { %v1762_v4 = vpop.eup %1761 }
 0x171   : >>> { %v625_v5 = vmul.f32 %v1762_v4, %v623_v1  ;;  %vm631_vm6 = vweird.f32 %v1762_v4 }
 0x172   : >>> { %vm632_vm7 = vmor %vm630_vm5, %vm631_vm6  ;;  %vm466_vm5 = vcmp.eq.s32.totalorder (%p494_p11), %v454_v7, %v451_v6 }
 0x173   : >>> { %v626_v8 = vmul.f32 %v1762_v4, %v625_v5 }
 0x175   : >>> { %v627_v9 = vmul.f32 0.5, %v626_v8 }
 0x177   : >>> { %v628_v10 = vsub.f32 1.5, %v627_v9 }
 0x179   : >>> { %v629_v11 = vmul.f32 %v1762_v4, %v628_v10 }
 0x17b   : >>> { %v633_v12 = vsel %vm632_vm7, %v1762_v4, %v629_v11 }
 0x17c   : >>> { %644 = vst [vmem:[%s643_s24] sm:$0xff] %v633_v12  ;;  %v634_v13 = vmul.f32 %v633_v12, %v621_v62  ;;  %s2032_s24 = smov [#allocation18] }
 0x17d   : >>> { %v685_v26 = vld [vmem:[%s2032_s24] sm:$0xf] }
 0x17e   : >>> { %646 = vst [vmem:[%s645_s25] sm:$0xff] %v634_v13  ;;  %s2034_s25 = smov [#allocation19] }
 0x17f   : >>> { %v686_v20 = vld [vmem:[%s2034_s25] sm:$0xf] }
 0x183   : >>> { %v648_v14 = vld [vmem:[%s647_s27] ss:$0 sm:$0xff]  ;;  %s2036_s27 = smov [#allocation20] }
 0x184   : >>> { %v657_v15 = vsel %vm656_vm8, %v648_v14, 0.0  ;;  %v687_v21 = vld [vmem:[%s2036_s27] sm:$0xf] }
 0x185   : >>> { %658 = vadd.xlane.f32.xlu0 %v657_v15  ;;  %v663_v16 = vld [vmem:[%s662_s20] ss:$0 sm:$0xff]  ;;  %s901_s20 = smov [#allocation29] }
 0x186   : >>> { %v672_v17 = vsel %vm671_vm9, %v663_v16, 0.0 }
 0x18d   : >>> { %673 = vadd.xlane.f32.xlu0 %v672_v17 }
 0x1f8   : >>> { %v659_v18 = vpop.xlane.xlu0 %658 }
 0x1f9   : >>> { %661 = vst [vmem:[%s660_s30] sm:$0xff] %v659_v18  ;;  %s2042_s30 = smov [#allocation21] }
 0x1fa   : >>> { %v688_v27 = vld [vmem:[%s2042_s30] sm:$0xf] }
 0x200   : >>> { %v674_v19 = vpop.xlane.xlu0 %673  ;;  %v678_v22 = vld [vmem:[%s677_s23] sm:$0xff]  ;;  %s705_s23 = smov [#allocation27] }
 0x201   : >>> { %676 = vst [vmem:[%s675_s21] sm:$0xff] %v674_v19  ;;  %s679_s21 = smov [#allocation30]  ;;  %v902_v25 = vld [vmem:[%s901_s20] sm:$0xff]  ;;  %v692_v29 = vmul.f32 %v686_v20, %v678_v22  ;;  %v696_v30 = vmul.f32 %v687_v21, %v678_v22  ;;  %v689_v50 = vmul.f32 %v685_v26, %v678_v22  ;;  %v699_v52 = vmul.f32 %v688_v27, %v678_v22  ;;  %s707_s20 = smov [#allocation28] }
 0x202   : >>> { %v913_v34 = vmul.f32 %v909_v23, %v902_v25  ;;  %v916_v35 = vmul.f32 %v910_v24, %v902_v25  ;;  %v920_v42 = vmul.f32 %v911_v28, %v902_v25  ;;  %v923_v46 = vmul.f32 %v912_v33, %v902_v25  ;;  %v706_v56 = vld [vmem:[%s705_s23] ss:$0 sm:$0xff]  ;;  %s774_s23 = smov [#allocation21] }
 0x203   : >>> { %v708_v57 = vld [vmem:[%s707_s20] ss:$0 sm:$0xff]  ;;  %s761_s20 = smov [#allocation20] }
 0x208   : >>> { %v680_v31 = vld [vmem:[%s679_s21] sm:$0xff]  ;;  %s2064_s21 = smov [#allocation20] }
 0x209   : >>> { %v904_v32 = vld [vmem:[%s903_s14] sm:$0xff]  ;;  %v693_v36 = vmul.f32 %v688_v27, %v680_v31  ;;  %v695_v37 = vmul.f32 %v685_v26, %v680_v31  ;;  %v690_v43 = vmul.f32 %v687_v21, %v680_v31  ;;  %v698_v47 = vmul.f32 %v686_v20, %v680_v31  ;;  %s2059_s14 = smov [#allocation10] }
 0x20a   : >>> { %v914_v38 = vmul.f32 %v911_v28, %v904_v32  ;;  %v917_v39 = vmul.f32 %v912_v33, %v904_v32  ;;  %v919_v40 = vmul.f32 %v909_v23, %v904_v32  ;;  %v922_v41 = vmul.f32 %v910_v24, %v904_v32 }
 0x20b   : >>> { %v694_v44 = vsub.f32 %v692_v29, %v693_v36  ;;  %v697_v45 = vadd.f32 %v696_v30, %v695_v37  ;;  %v691_v54 = vsub.f32 %v689_v50, %v690_v43  ;;  %v700_v55 = vadd.f32 %v699_v52, %v698_v47 }
 0x20c   : >>> { %v915_v48 = vsub.f32 %v913_v34, %v914_v38  ;;  %v918_v49 = vsub.f32 %v916_v35, %v917_v39  ;;  %v921_v51 = vadd.f32 %v920_v42, %v919_v40  ;;  %v924_v53 = vadd.f32 %v923_v46, %v922_v41 }
 0x20d   : >>> { %702 = vst [vmem:[%s2034_s25] sm:$0xf] %v694_v44  ;;  %s2066_s25 = smov [#allocation19] }
 0x20e   : >>> { %703 = vst [vmem:[%s2036_s27] sm:$0xf] %v697_v45  ;;  %s930_s27 = smov [#allocation14] }
 0x20f   : >>> { %925 = vst [vmem:[%s2038_s17] sm:$0xf] %v915_v48  ;;  %s2068_s17 = smov [#allocation12] }
 0x210   : >>> { %926 = vst [vmem:[%s2040_s18] sm:$0xf] %v918_v49  ;;  %s2073_s18 = smov [#allocation16] }
 0x211   : >>> { %927 = vst [vmem:[%s2045_s19] sm:$0xf] %v921_v51  ;;  %s712_s19 = smov [#allocation21] }
 0x212   : >>> { %928 = vst [vmem:[%s2048_s9] sm:$0xf] %v924_v53  ;;  %s2076_s9 = smov [#allocation18] }
 0x213   : >>> { %701 = vst [vmem:[%s2032_s24] sm:$0xf] %v691_v54  ;;  %s734_s24 = smov [#allocation25] }
 0x214   : >>> { %704 = vst [vmem:[%s2042_s30] sm:$0xf] %v700_v55  ;;  %v714_v59 = vld [vmem:[%s2066_s25] sm:$0xf]  ;;  %s775_s30 = smov [#allocation26] }
 0x215   : >>> { %v715_v58 = vld [vmem:[%s2064_s21] sm:$0xf]  ;;  %v718_v10 = vmul.f32 %v714_v59, %v708_v57  ;;  %v721_v16 = vmul.f32 %v714_v59, %v706_v56 }
 0x216   : >>> { %v931_v60 = vld [vmem:[%s2059_s14] ss:$0 sm:$0xff]  ;;  %v1647_v62 = vld [vmem:[%s2059_s14 + $0x3] ss:$0 sm:$0xff]  ;;  %v726_v13 = vmul.f32 %v715_v58, %v708_v57  ;;  %v723_v14 = vmul.f32 %v715_v58, %v706_v56 }
 0x217   : >>> { %v1646_v61 = vld [vmem:[%s2059_s14 - $0x1] sm:$0xe]  ;;  %v1651_v2 = vld [vmem:[%s2068_s17 + $0x3] ss:$0 sm:$0xff] }
 0x218   : >>> { %v938_v63 = vsel %vm861_vm10, %v931_v60, %v1646_v61  ;;  %v955_v0 = vld [vmem:[%s2068_s17] ss:$0 sm:$0xff]  ;;  %v1649_v4 = vld [vmem:[%s930_s27 + $0x1] sm:$0x7] }
 0x219   : >>> { %v1650_v1 = vld [vmem:[%s2068_s17 - $0x1] sm:$0xe]  ;;  %941 = vst [vmem:[%s2059_s14] sm:$0xf] %v938_v63  ;;  %v950_v8 = vsel %vm873_vm11, %v1647_v62, %v1649_v4 }
 0x21a   : >>> { %v942_v3 = vld [vmem:[%s930_s27] ss:$0 sm:$0xff]  ;;  %v962_v5 = vsel %vm861_vm10, %v955_v0, %v1650_v1  ;;  %v1653_v9 = vld [vmem:[%s2073_s18 + $0x1] sm:$0x7] }
 0x21b   : >>> { %1648 = vst [vmem:[%s2059_s14 + $0x1] sm:$0x1] %v942_v3  ;;  %v966_v11 = vld [vmem:[%s2073_s18] ss:$0 sm:$0xff]  ;;  %v974_v12 = vsel %vm873_vm11, %v1651_v2, %v1653_v9  ;;  %s733_s14 = smov [#allocation18] }
 0x21c   : >>> { %952 = vst [vmem:[%s930_s27] sm:$0xf] %v950_v8  ;;  %v713_v15 = vld [vmem:[%s2076_s9] sm:$0xf]  ;;  %s2115_s27 = smov [#allocation21] }
 0x21d   : >>> { %965 = vst [vmem:[%s2068_s17] sm:$0xf] %v962_v5  ;;  %v716_v17 = vld [vmem:[%s712_s19] sm:$0xf]  ;;  %v717_v18 = vmul.f32 %v713_v15, %v706_v56  ;;  %v720_v19 = vmul.f32 %v713_v15, %v708_v57 }
 0x21e   : >>> { %1652 = vst [vmem:[%s2068_s17 + $0x1] sm:$0x1] %v966_v11  ;;  %v727_v20 = vmul.f32 %v716_v17, %v706_v56  ;;  %v724_v21 = vmul.f32 %v716_v17, %v708_v57  ;;  %v741_v26 = vld [vmem:[%s734_s24] ss:$0 sm:$0xff]  ;;  %s2117_s17 = smov [#allocation20]  ;;  %s2127_s24 = smov [#allocation19] }
 0x21f   : >>> { %976 = vst [vmem:[%s2073_s18] sm:$0xf] %v974_v12  ;;  %v719_v22 = vsub.f32 %v717_v18, %v718_v10  ;;  %v722_v25 = vadd.f32 %v721_v16, %v720_v19  ;;  %v782_v27 = vld [vmem:[%s775_s30] ss:$0 sm:$0xff]  ;;  %s1836_s18 = smov 1   ;;  %s854_s30 = smov [#allocation20] }
 0x220   : >>> { %v728_v23 = vadd.f32 %v727_v20, %v726_v13  ;;  %v725_v24 = vsub.f32 %v723_v14, %v724_v21 }
 0x221   : >>> { %729 = vst [vmem:[%s2076_s9] sm:$0xf] %v719_v22  ;;  %s790_s9 = smov [#allocation19] }
 0x222   : >>> { %732 = vst [vmem:[%s712_s19] sm:$0xf] %v728_v23  ;;  %s1837_s19 = smov 127  }
 0x223   : >>> { %731 = vst [vmem:[%s2064_s21] sm:$0xf] %v725_v24  ;;  %s748_s21 = smov [#allocation19] }
 0x224   : >>> { %730 = vst [vmem:[%s2066_s25] sm:$0xf] %v722_v25  ;;  %s2113_s25 = smov [#allocation18] }
 0x228   : >>> { %v742_v28 = vld [vmem:[%s733_s14] sm:$0xf] }
 0x229   : >>> { %v783_v29 = vld [vmem:[%s774_s23] sm:$0xf]  ;;  %v746_v30 = vsel %vm745_vm12, %v741_v26, %v742_v28 }
 0x22a   : >>> { %v787_v31 = vsel %vm786_vm13, %v782_v27, %v783_v29  ;;  %v768_v32 = vld [vmem:[%s761_s20] sm:$0xf]  ;;  %747 = vst [vmem:[%s733_s14] sm:$0xf] %v746_v30  ;;  %s853_s14 = smov [#allocation18] }
 0x22b   : >>> { %788 = vst [vmem:[%s774_s23] sm:$0xf] %v787_v31  ;;  %v772_v33 = vsel %vm771_vm14, 0.0, %v768_v32  ;;  %v755_v34 = vld [vmem:[%s748_s21] sm:$0xf]  ;;  %s878_s23 = smov [#allocation21] }
 0x22c   : >>> { %773 = vst [vmem:[%s761_s20] sm:$0xf] %v772_v33  ;;  %v759_v35 = vsel %vm758_vm15, 0.0, %v755_v34  ;;  %s977_s20 = sadd.s32 (%p494_p11), 1, %s1829_s28  }
 0x22d   : >>> { %760 = vst [vmem:[%s748_s21] sm:$0xf] %v759_v35  ;;  %s402_s21 = smov (%p494_p11), [#allocation18]  ;;  %p490_p12 = scmp.ge.s32.totalorder (%p494_p11), %s977_s20, 15 }
 0x22e   : >> { %s2282_s28 = smov (%p494_p11), %s977_s20 }
 0x231   : >>> { %v795_v36 = vld [vmem:[%s2113_s25] sm:$0xf] }
 0x232   : >>> { %v823_v37 = vld [vmem:[%s2115_s27] sm:$0xf]  ;;  %796 = vrot.lane.b32.xlu1 %v795_v36, %s1836_s18 }
 0x233   : >>> { %824 = vrot.lane.b32.xlu0 %v823_v37, %s1836_s18  ;;  %v827_v38 = vld [vmem:[%s2117_s17] sm:$0xf] }
 0x234   : >>> { %828 = vrot.lane.b32.xlu2 %v827_v38, %s1836_s18  ;;  %v791_v39 = vld [vmem:[%s790_s9] sm:$0xf] }
 0x235   : >>> { %v812_v40 = vld [vmem:[%s790_s9] sm:$0xf] }
 0x236   : >>> { %v844_v41 = vld [vmem:[%s2115_s27] sm:$0xf] }
 0x237   : >>> { %v794_v44 = vld [vmem:[%s2113_s25] sm:$0xf] }
 0x238   : >>> { %v826_v55 = vld [vmem:[%s2117_s17] sm:$0xf] }
 0x23a   : >>> { %792 = vrot.lane.b32.xlu1 %v791_v39, %s1836_s18 }
 0x23c   : >>> { %813 = vrot.lane.b32.xlu2 %v812_v40, %s1837_s19 }
 0x242   : >>> { %845 = vrot.lane.b32.xlu1 %v844_v41, %s1837_s19 }
 0x28e   : >>> { %v829_v42 = vpop.permute.xlu2 %828 }
 0x28f   : >>> { %v833_v51 = vsel %vm800_vm1, %v827_v38, %v829_v42 }
 0x296   : >>> { %v814_v43 = vpop.permute.xlu2 %813 }
 0x297   : >>> { %v818_v45 = vsel %vm817_vm0, %v794_v44, %v814_v43 }
 0x298   : >>> { %820 = vst [vmem:[%s790_s9] sm:$0xf] %v818_v45 }
 0x29f   : >>> { %v879_v46 = vld [vmem:[%s2127_s24] ss:$0 sm:$0xff]  ;;  %v1643_v48 = vld [vmem:[%s2127_s24 + $0x3] ss:$0 sm:$0xff] }
 0x2a0   : >>> { %v1642_v47 = vld [vmem:[%s2127_s24 - $0x1] sm:$0xe] }
 0x2a1   : >>> { %v886_v49 = vsel %vm861_vm10, %v879_v46, %v1642_v47 }
 0x2a2   : >>> { %889 = vst [vmem:[%s2127_s24] sm:$0xf] %v886_v49 }
 0x2a4   : >>> { %v797_v50 = vpop.permute.xlu1 %796 }
 0x2a5   : >>> { %v825_v52 = vpop.permute.xlu0 %824  ;;  %v801_v56 = vsel %vm800_vm1, %v795_v36, %v797_v50 }
 0x2a6   : >>> { %v837_v53 = vsel %vm804_vm3, %v825_v52, %v833_v51 }
 0x2a7   : >>> { %v843_v54 = vsel %vm1491_vm2, %v837_v53, 0.0 }
 0x2a8   : >>> { %851 = vst [vmem:[%s2117_s17] sm:$0xf] %v843_v54  ;;  %s455_s17 = smov (%p494_p11), [#allocation21] }
 0x2ac   : >>> { %v793_v57 = vpop.permute.xlu1 %792 }
 0x2ad   : >>> { %v805_v58 = vsel %vm804_vm3, %v793_v57, %v801_v56 }
 0x2ae   : >>> { %v811_v59 = vsel %vm1491_vm2, %v805_v58, 0.0 }
 0x2af   : >>> { %819 = vst [vmem:[%s2113_s25] sm:$0xf] %v811_v59  ;;  %v1641_v61 = vld [vmem:[%s854_s30 + $0x1] sm:$0x7]  ;;  %v866_v4 = vld [vmem:[%s854_s30] ss:$0 sm:$0xff]  ;;  %s421_s25 = smov (%p494_p11), [#allocation19] }
 0x2b4   : >>> { %v846_v60 = vpop.permute.xlu1 %845 }
 0x2b5   : >>> { %v850_v62 = vsel %vm817_vm0, %v826_v55, %v846_v60 }
 0x2b6   : >>> { %v855_v63 = vld [vmem:[%s853_s14] ss:$0 sm:$0xff]  ;;  %v1639_v1 = vld [vmem:[%s853_s14 + $0x3] ss:$0 sm:$0xff]  ;;  %852 = vst [vmem:[%s2115_s27] sm:$0xf] %v850_v62  ;;  %s438_s27 = smov (%p494_p11), [#allocation20] }
 0x2b7   : >>> { %v1638_v0 = vld [vmem:[%s853_s14 - $0x1] sm:$0xe]  ;;  %v874_v3 = vsel %vm873_vm11, %v1639_v1, %v1641_v61 }
 0x2b8   : >>> { %v862_v2 = vsel %vm861_vm10, %v855_v63, %v1638_v0  ;;  %876 = vst [vmem:[%s854_s30] sm:$0xf] %v874_v3 }
 0x2b9   : >>> { %865 = vst [vmem:[%s853_s14] sm:$0xf] %v862_v2 }
 0x2ba   : >>> { %1640 = vst [vmem:[%s853_s14 + $0x1] sm:$0x1] %v866_v4 }
 0x2bd   : >>> { %v890_v5 = vld [vmem:[%s878_s23] ss:$0 sm:$0xff]  ;;  %v1645_v8 = vld [vmem:[%s878_s23 + $0x1] sm:$0x7] }
 0x2be   : >>> { %1644 = vst [vmem:[%s2127_s24 + $0x1] sm:$0x1] %v890_v5  ;;  %v898_v9 = vsel %vm873_vm11, %v1643_v48, %v1645_v8  ;;  %496 = sbr.rel (!%p494_p11) target bundleno = 265 (0x109), region = 470 }
 0x2bf   : >>> { %900 = vst [vmem:[%s878_s23] sm:$0xf] %v898_v9  ;;  %v444_v14 = vld [vmem:[%s438_s27] sm:$0xf] (%p494_p11) }
 0x2c0   : >> { %v445_v18 = vsel (%p494_p11), %vm1491_vm2, %v444_v14, 0.0 }
 0x2c1   : >> { %v408_v10 = vld [vmem:[%s402_s21] sm:$0xf] (%p494_p11)  ;;  %v446_v20 = vmul.f32 (%p494_p11), %v445_v18, %v445_v18 }
 0x2c2   : >> { %v409_v12 = vsel (%p494_p11), %vm1491_vm2, %v408_v10, 0.0 }
 0x2c3   : >> { %v410_v16 = vmul.f32 %v409_v12, %v409_v12 }
 0x2c5   : >> { %v427_v11 = vld [vmem:[%s421_s25] sm:$0xf]  ;;  %v414_v23 = vsel %vm413_vm4, 0.0, %v410_v16 }
 0x2c6   : >> { %v428_v13 = vsel %vm1491_vm2, %v427_v11, 0.0  ;;  %v461_v15 = vld [vmem:[%s455_s17] sm:$0xf] }
 0x2c7   : >> { %v429_v17 = vmul.f32 %v428_v13, %v428_v13  ;;  %v462_v19 = vsel %vm1491_vm2, %v461_v15, 0.0 }
 0x2c8   : >> { %v463_v22 = vmul.f32 %v462_v19, %v462_v19 }
 0x2c9   : >> { %v431_v21 = vadd.f32 %v429_v17, %v410_v16  ;;  %v430_v25 = vadd.f32 %v429_v17, %v414_v23 }
 0x2ca   : >> { %v467_v28 = vsel %vm466_vm5, 0.0, %v463_v22 }
 0x2cb   : >> { %v448_v24 = vadd.f32 %v446_v20, %v431_v21  ;;  %v447_v27 = vadd.f32 %v446_v20, %v430_v25 }
 0x2cd   : >> { %v469_v26 = vadd.f32 %v463_v22, %v448_v24  ;;  %v468_v29 = vadd.f32 %v467_v28, %v447_v27 }
 0x2cf   : >> { %470 = vadd.xlane.f32.xlu0 %v469_v26 }
 0x2d7   : >> { %478 = vadd.xlane.f32.xlu0 %v468_v29 }
 0x342   : >> { %v471_v30 = vpop.xlane.xlu0 %470 }
 0x343   : >> { %v472_v31 = vrot.slane %v471_v30, 4 }
 0x345   : >> { %v473_v32 = vadd.f32 %v472_v31, %v471_v30 }
 0x347   : >> { %v474_v33 = vrot.slane %v473_v32, 2 }
 0x349   : >> { %v475_v37 = vadd.f32 %v474_v33, %v473_v32 }
 0x34a   : >> { %v479_v34 = vpop.xlane.xlu0 %478 }
 0x34b   : >> { %v480_v35 = vrot.slane %v479_v34, 4  ;;  %v476_v40 = vrot.slane %v475_v37, 1 }
 0x34d   : >> { %v481_v36 = vadd.f32 %v480_v35, %v479_v34  ;;  %v477_v43 = vadd.f32 %v476_v40, %v475_v37 }
 0x34f   : >> { %v482_v38 = vrot.slane %v481_v36, 2 }
 0x351   : >> { %v483_v39 = vadd.f32 %v482_v38, %v481_v36 }
 0x353   : >> { %v484_v41 = vrot.slane %v483_v39, 1 }
 0x355   : >> { %v485_v42 = vadd.f32 %v484_v41, %v483_v39 }
 0x357   : >> { %1676 = vpush %v485_v42 }
 0x358   : >> { %1678 = vpush %v477_v43 }
 0x388   : >> { %s1677_s16 = spop %1676 }
 0x389   : >> { %s1679_s18 = spop %1678 }
 0x38a   : >> { %s488_s9 = smul.f32 1e-10, %s1679_s18 }
 0x38c   : >> { %p489_p13 = scmp.le.f32.partialorder %s1677_s16, %s488_s9 }
 0x38e   : >> { %p491_p0 = por %p490_p12, %p489_p13 }
 0x390   : > { %979 = sbr.rel (!%p491_p0) target bundleno = 264 (0x108), region = 481 }
 0x395 PF: > { %s984_s19 = smov [#allocation18]  ;;  %v988_v6 = vmov %v1972_v6  ;;  %v991_v7 = vmov %v1974_v7  ;;  %v1026_v44 = vld [vmem:[#allocation10] sm:$0xf]  ;;  %v1032_v45 = vld [vmem:[#allocation12] sm:$0xf]  ;;  %s1004_s28 = smov [#allocation21] }
 0x396   : > { %v1008_v6 = vmov %v1972_v6  ;;  %v1011_v7 = vmov %v1974_v7  ;;  %v992_v46 = vld [vmem:[%s984_s19] sm:$0xf]  ;;  %vm995_vm6 = vcmp.eq.s32.totalorder %v991_v7, %v988_v6  ;;  %1029 = vst [vmem:[%s321_s10] sm:$0xf] %v1026_v44  ;;  %s2283_s24 = scalar_lea.vmem [#allocation13], %s1968_s26  ;;  %v1044_v49 = vld [vmem:[#allocation16] sm:$0xf] }
 0x397   : > { %vm1015_vm7 = vcmp.eq.s32.totalorder %v1011_v7, %v1008_v6  ;;  %v1038_v47 = vld [vmem:[#allocation14] sm:$0xf]  ;;  %v996_v48 = vsel %vm995_vm6, %v992_v46, 0.0  ;;  %1035 = vst [vmem:[%s2283_s24] sm:$0xf] %v1032_v45  ;;  %s2284_s30 = scalar_lea.vmem [#allocation15], %s1968_s26  ;;  %s2285_s14 = scalar_lea.vmem [#allocation17], %s1968_s26 }
 0x398   : > { %v997_v50 = vrot.slane %v996_v48, 4  ;;  %v1012_v51 = vld [vmem:[%s1004_s28] sm:$0xf]  ;;  %1041 = vst [vmem:[%s2284_s30] sm:$0xf] %v1038_v47  ;;  %s980_s23 = sand.u32 7, %s1809_s11   ;;  %s2286_s20 = scalar_lea.vmem [#allocation8], %s1970_s29 }
 0x399   : > { %v1016_v52 = vsel %vm1015_vm7, %v1012_v51, 0.0  ;;  %1047 = vst [vmem:[%s2285_s14] sm:$0xf] %v1044_v49  ;;  %s981_s21 = scalar_lea.vmem %s2286_s20, %s980_s23 [#allocation8]  ;;  %s2287_s25 = scalar_lea.vmem [#allocation9], %s1970_s29 }
 0x39a   : > { %v998_v53 = vadd.f32 %v997_v50, %v996_v48  ;;  %v1017_v54 = vrot.slane %v1016_v52, 4  ;;  %s983_s27 = scalar_lea.vmem %s2287_s25, %s980_s23 [#allocation9]  ;;  %s985_s21 = smov %s981_s21 }
 0x39b   : > { %s1005_s27 = smov %s983_s27  ;;  %s1075_s17 = sshrl.u32 (%p1937_p4), %s1809_s11, 3 }
 0x39c   : > { %v999_v6 = vrot.slane %v998_v53, 2  ;;  %v1018_v7 = vadd.f32 %v1017_v54, %v1016_v52  ;;  %s1076_s16 = sadd.s32 (%p1937_p4), %s1813_s12, %s1075_s17  ;;  %s2288_s18 = scalar_lea.vmem (%p1937_p4), [#allocation8], %s1970_s29 }
 0x39d   : > { %s1660_s9 = sshll.u32 (%p1937_p4), %s1076_s16, 3 }
 0x39e   : > { %v1000_v55 = vadd.f32 %v999_v6, %v998_v53  ;;  %v1019_v56 = vrot.slane %v1018_v7, 2  ;;  %s1078_s24 = scalar_lea.vmem (%p1937_p4), %s2263_s4, %s1660_s9 }
 0x3a0   : > { %v1001_v57 = vrot.slane %v1000_v55, 1  ;;  %v1020_v58 = vadd.f32 %v1019_v56, %v1018_v7 }
 0x3a2   : > { %v1002_v59 = vadd.f32 %v1001_v57, %v1000_v55  ;;  %v1021_v60 = vrot.slane %v1020_v58, 1  ;;  %1074 = sbr.rel (!%p1937_p4) target bundleno = 941 (0x3ad), region = 158 }
 0x3a4   : > { %1003 = vst [vmem:[%s985_s21] sm:$0x1] %v1002_v59  ;;  %v1022_v61 = vadd.f32 %v1021_v60, %v1020_v58 }
 0x3a6   : > { %1023 = vst [vmem:[%s1005_s27] sm:$0x1] %v1022_v61 }
 0x3ab   : > { %v1107_v62 = vld [vmem:[%s2288_s18] sm:$0xff] }
 0x3ac   : > { %1108 = vst [vmem:[%s1078_s24] sm:$0xff] %v1107_v62 }
 0x3ad PF: > { %1114 = sbr.rel (!%p1937_p4) target bundleno = 949 (0x3b5), region = 196  ;;  %s1115_s30 = sshrl.u32 (%p1937_p4), %s1809_s11, 3 }
 0x3ae   : > { %s1116_s14 = sadd.s32 (%p1937_p4), %s1813_s12, %s1115_s30  ;;  %s2289_s23 = scalar_lea.vmem (%p1937_p4), [#allocation9], %s1970_s29 }
 0x3af   : > { %s1661_s20 = sshll.u32 (%p1937_p4), %s1116_s14, 3 }
 0x3b0   : > { %s1118_s27 = scalar_lea.vmem (%p1937_p4), %s2264_s5, %s1661_s20 }
 0x3b3   : > { %v1147_v63 = vld [vmem:[%s2289_s23] sm:$0xff] }
 0x3b4   : > { %1148 = vst [vmem:[%s1118_s27] sm:$0xff] %v1147_v63 }
 0x3b5 PF: > { %s1662_s22 = sshll.u32 %s1813_s12, 3  ;;  %v1172_v0 = vld [vmem:[%s321_s10] sm:$0xf]  ;;  %s2290_s29 = scalar_lea.vmem [#allocation13], %s1968_s26 }
 0x3b6   : > { %s1153_s17 = sadd.s32 %s1809_s11, %s1662_s22  ;;  %v1209_v1 = vld [vmem:[%s2290_s29] sm:$0xf]  ;;  %s2291_s14 = scalar_lea.vmem [#allocation15], %s1968_s26 }
 0x3b7   : > { %s1663_s16 = sshll.u32 %s1153_s17, 2  ;;  %v1246_v2 = vld [vmem:[%s2291_s14] sm:$0xf]  ;;  %s2292_s21 = sld [smem:[#allocation36_spill]] }
 0x3b8   : > { %s1155_s19 = scalar_lea.vmem %s2265_s6, %s1663_s16  ;;  %s1192_s30 = scalar_lea.vmem %s2266_s7, %s1663_s16 }
 0x3b9   : > { %1173 = vst [vmem:[%s1155_s19] sm:$0xf] %v1172_v0  ;;  %s1229_s11 = scalar_lea.vmem %s2267_s8, %s1663_s16  ;;  %s2293_s27 = scalar_lea.vmem [#allocation17], %s1968_s26 }
 0x3ba   : > { %v1283_v3 = vld [vmem:[%s2293_s27] sm:$0xf]  ;;  %1210 = vst [vmem:[%s1192_s30] sm:$0xf] %v1209_v1 }
 0x3bb   : > { %1247 = vst [vmem:[%s1229_s11] sm:$0xf] %v1246_v2 }
 0x3bd   : > { %s1266_s25 = scalar_lea.vmem %s2292_s21, %s1663_s16 }
 0x3be   : > { %1284 = vst [vmem:[%s1266_s25] sm:$0xf] %v1283_v3 }
 0x3bf PF: > { %s16_s15 = sadd.s32 1, %s1825_s15   ;;  %s2294_s30 = sld [smem:[#allocation31_spill]] }
 0x3c0   : > { %p13_p1 = scmp.ge.s32.totalorder %s16_s15, 26   ;;  %s2295_s10 = sld [smem:[#allocation35_spill]] }
 0x3c1   : > { %s2296_s12 = sld [smem:[#allocation32_spill]]  ;;  %s2299_s11 = smov %s1817_s13 }
 0x3c2   : > { %s2297_s22 = sld [smem:[#allocation33_spill]] }
 0x3c3   : > { %s2298_s14 = sld [smem:[#allocation34_spill]] }
 0x3c4   :  { %15 = sbr.rel (!%p13_p1) target bundleno = 6 (0x6), region = 492 }
 0x3c8   : > { %s2300_s13 = smov %s2297_s22 }

// kernel: _gdatt_core.2
= control target key start
LH: loop header
LB: loop body
LE: loop exit
PB: predicated region body
PF: predicated region fallthrough
CT: control target
= control target key end

     0   :  { %8 = vsyncpa [#allocation3], 0  ;;  %s1830_s0 = inlined_call_operand.hbm [shape: f32[8,16,16], index: 0, kind: input, shape index: {}]   ;;  %s1831_s1 = inlined_call_operand.hbm [shape: f32[16,24], index: 1, kind: input, shape index: {}]   ;;  %s1832_s2 = inlined_call_operand.hbm [shape: f32[3,8,16], index: 2, kind: input, shape index: {}]   ;;  %s1833_s3 = inlined_call_operand.vmem [shape: f32[3,8,64], index: 3, kind: output, shape index: {}]  }
   0x1   :  { %9 = vsyncpa [#allocation5], 0  ;;  %s27_s14 = sshll.u32 %s1831_s1, 4  ;;  %s1478_s15 = smov [#allocation4]   ;;  %s28_s14 = int_to_ptr.hbm [resolvable:$true] %s27_s14 }
   0x2   :  { %s29_s16 = sshll.u32 %s1478_s15, 4  ;;  %s14_s19 = sshll.u32 %s1830_s0, 4  ;;  %s30_s16 = int_to_ptr.vmem [resolvable:$true] %s29_s16  ;;  %s15_s19 = int_to_ptr.hbm [resolvable:$true] %s14_s19 }
   0x3   :  { %s1479_s20 = smov 128   ;;  %s1480_s21 = smov 8  }
   0x4   :  { %35 = dma.hbm_to_vmem [thread:$0]  %s28_s14, 256, %s30_s16, [#allocation5], %s1479_s20, %s1479_s20, %s1480_s21  }
   0x5   :  { %s1481_s22 = smov [#allocation2]   ;;  %s40_s26 = sshll.u32 %s1832_s2, 4  ;;  %s41_s26 = int_to_ptr.hbm [resolvable:$true] %s40_s26 }
   0x6   :  { %s16_s23 = sshll.u32 %s1481_s22, 4  ;;  %s1482_s1 = smov [#allocation6]   ;;  %s17_s23 = int_to_ptr.vmem [resolvable:$true] %s16_s23 }
   0x7   :  { %22 = dma.hbm_to_vmem [thread:$0]  %s15_s19, 2048, %s17_s23, [#allocation3], %s1479_s20, %s1479_s20, %s1480_s21  }
   0x8   :  { %s42_s27 = sshll.u32 %s1482_s1, 4  ;;  %s43_s27 = int_to_ptr.vmem [resolvable:$true] %s42_s27 }
   0x9   :  { %48 = dma.hbm_to_vmem [thread:$0]  %s41_s26, 384, %s43_s27, [#allocation5], %s1479_s20, %s1479_s20, %s1480_s21  }
   0xa   :  { %1474 = dma.done.wait [#allocation3], 2048  }
   0xb   :  { %1475 = vsyncadd [#allocation3], 4294965248 }
   0xc   :  { %1476 = dma.done.wait [#allocation5], 640  }
   0xd   :  { %1477 = vsyncadd [#allocation5], 4294966656  ;;  %v78_v0 = vld [vmem:[#allocation4 + $0x8] sm:$0xff]  ;;  %v77_v1 = vld [vmem:[#allocation4] sm:$0xff]  ;;  %vm79_vm0 = vcmask 130048   ;;  %s1483_s0 = smov 120  }
   0xe   :  { %142 = vmatpush.msra.mxu0 %v78_v0  ;;  %1302 = vmatpush.msra.mxu2 %v78_v0  ;;  %v61_v2 = vld [vmem:[#allocation2] sm:$0xff]  ;;  %v71_v4 = vld [vmem:[#allocation2 + $0x50] sm:$0xff]  ;;  %v62_v6 = vld [vmem:[#allocation2 + $0x8] sm:$0xff]  ;;  %s1484_s2 = smov 112   ;;  %vm358_vm1 = vcmask 1047556   ;;  %s1487_s28 = smov 24  }
   0xf   :  { %v73_v3 = vld [vmem:[#allocation2 + $0x60] sm:$0xff]  ;;  %1301 = vmatpush.msra.mxu1 %v78_v0  ;;  %1303 = vmatpush.msra.mxu3 %v78_v0  ;;  %v75_v5 = vld [vmem:[#allocation2 + $0x70] sm:$0xff]  ;;  %v74_v7 = vld [vmem:[#allocation2 + $0x68] sm:$0xff]  ;;  %s1488_s29 = smov 40   ;;  %s1489_s30 = smov 48   ;;  %vm498_vm2 = vcmask 64512  }
  0x10   :  { %143 = vmatpush.msra.mxu0 %v77_v1  ;;  %1305 = vmatpush.msra.mxu2 %v77_v1  ;;  %v72_v8 = vld [vmem:[#allocation2 + $0x58] sm:$0xff]  ;;  %v63_v10 = vld [vmem:[#allocation2 + $0x10] sm:$0xff]  ;;  %v65_v12 = vld [vmem:[#allocation2 + $0x20] sm:$0xff]  ;;  %s1490_s4 = smov 16   ;;  %s1491_s5 = smov 32   ;;  %vm501_vm3 = vcmask 195584  }
  0x11   :  { %1259 = vmatmul.msk.f32.vlgmr.msra.gmra.mxu0 %vm79_vm0, %v61_v2  ;;  %1271 = vmatmul.msk.f32.vlgmr.msra.gmra.mxu2 %vm79_vm0, %v73_v3  ;;  %v76_v9 = vld [vmem:[#allocation2 + $0x78] sm:$0xff]  ;;  %v66_v13 = vld [vmem:[#allocation2 + $0x28] sm:$0xff]  ;;  %v67_v14 = vld [vmem:[#allocation2 + $0x30] sm:$0xff]  ;;  %vm503_vm4 = vcmask 261120   ;;  %vm505_vm5 = vcmask 326656   ;;  %s1492_s6 = smov 56  }
  0x12   :  { %1304 = vmatpush.msra.mxu1 %v77_v1  ;;  %1306 = vmatpush.msra.mxu3 %v77_v1  ;;  %v64_v11 = vld [vmem:[#allocation2 + $0x18] sm:$0xff]  ;;  %v69_v16 = vld [vmem:[#allocation2 + $0x40] sm:$0xff]  ;;  %v70_v17 = vld [vmem:[#allocation2 + $0x48] sm:$0xff]  ;;  %vm509_vm6 = vcmask 457728   ;;  %vm507_vm7 = vcmask 392192   ;;  %vm511_vm8 = vcmask 523264  }
  0x13   :  { %1269 = vmatmul.msk.f32.vlgmr.msra.gmra.mxu1 %vm79_vm0, %v71_v4  ;;  %1273 = vmatmul.msk.f32.vlgmr.msra.gmra.mxu3 %vm79_vm0, %v75_v5  ;;  %v68_v15 = vld [vmem:[#allocation2 + $0x38] sm:$0xff]  ;;  %v193_v30 = vld [vmem:[#allocation6] sm:$0xff] }
  0x14   :  { %v1570_v54 = vld [vmem:[#allocation6 + $0x8] sm:$0xff] }
  0x19   :  { %1260 = vmatmul.msk.f32.gmra.mxu0 %vm79_vm0, %v62_v6  ;;  %1272 = vmatmul.msk.f32.gmra.mxu2 %vm79_vm0, %v74_v7 }
  0x1b   :  { %1270 = vmatmul.msk.f32.gmra.mxu1 %vm79_vm0, %v72_v8  ;;  %1274 = vmatmul.msk.f32.gmra.mxu3 %vm79_vm0, %v76_v9 }
  0x21   :  { %1261 = vmatmul.msk.f32.gmra.mxu0 %vm79_vm0, %v63_v10 }
  0x29   :  { %1262 = vmatmul.msk.f32.gmra.mxu0 %vm79_vm0, %v64_v11 }
  0x31   :  { %1263 = vmatmul.msk.f32.gmra.mxu0 %vm79_vm0, %v65_v12 }
  0x39   :  { %1264 = vmatmul.msk.f32.gmra.mxu0 %vm79_vm0, %v66_v13 }
  0x41   :  { %1265 = vmatmul.msk.f32.gmra.mxu0 %vm79_vm0, %v67_v14 }
  0x49   :  { %1266 = vmatmul.msk.f32.gmra.mxu0 %vm79_vm0, %v68_v15 }
  0x51   :  { %1267 = vmatmul.msk.f32.gmra.mxu0 %vm79_vm0, %v69_v16 }
  0x59   :  { %1268 = vmatmul.msk.f32.gmra.mxu0 %vm79_vm0, %v70_v17 }
  0x8e   :  { %v145_v18 = vpop.f32.mrf.mxu0 }
  0x90   :  { %v175_v25 = vpop.f32.mrf.mxu1 }
  0x94   :  { %v181_v19 = vpop.f32.mrf.mxu2 }
  0x95   :  { %v1347_v26 = vpack.i.bf16 %v181_v19, %v175_v25 }
  0x96   :  { %v148_v20 = vpop.f32.mrf.mxu0  ;;  %v187_v41 = vpop.f32.mrf.mxu3 }
  0x97   :  { %211 = vmatpush.msrb.mxu1 %v148_v20  ;;  %v1322_v21 = vpack.i.bf16 %v145_v18, %v148_v20  ;;  %v1392_v42 = vpack.i.bf16 %v187_v41, %v181_v19 }
  0x98   :  { %v178_v32 = vpop.f32.mrf.mxu1 }
  0x99   :  { %1323 = vrot.lane.b32.xlu0 %v1322_v21, %s1483_s0  ;;  %212 = vmatpush.msrb.mxu1 %v145_v18  ;;  %v1397_v50 = vpack.i.bf16 %v175_v25, %v178_v32  ;;  %v1586_v21 = vld [vmem:[#allocation6 + $0x10] sm:$0xff] }
  0x9a   :  { %1275 = vmatmul.msk.f32.vlgmr.msrb.gmra.mxu1 %vm79_vm0, %v193_v30 }
  0x9c   :  { %v1542_v22 = vpop.f32.mrf.mxu2 }
  0x9e   :  { %v151_v23 = vpop.f32.mrf.mxu0  ;;  %v190_v46 = vpop.f32.mrf.mxu3 }
  0x9f   :  { %v1342_v24 = vpack.i.bf16 %v151_v23, %v1542_v22  ;;  %v1357_v29 = vpack.i.bf16 %v151_v23, %v145_v18  ;;  %v1367_v48 = vpack.i.bf16 %v187_v41, %v190_v46 }
  0xa1   :  { %1343 = vrot.lane.b32.xlu2 %v1342_v24, %s1483_s0 }
  0xa6   :  { %v154_v27 = vpop.f32.mrf.mxu0 }
  0xa7   :  { %231 = vmatpush.msrb.mxu2 %v154_v27  ;;  %v1337_v36 = vpack.i.bf16 %v178_v32, %v154_v27  ;;  %v1352_v39 = vpack.i.bf16 %v154_v27, %v148_v20 }
  0xa9   :  { %1348 = vrot.lane.b32.xlu2 %v1347_v26, %s1483_s0  ;;  %232 = vmatpush.msrb.mxu2 %v151_v23 }
  0xaa   :  { %1276 = vmatmul.msk.f32.vlgmr.msrb.gmra.mxu2 %vm79_vm0, %v193_v30 }
  0xae   :  { %v157_v28 = vpop.f32.mrf.mxu0 }
  0xaf   :  { %v1387_v47 = vpack.i.bf16 %v157_v28, %v190_v46 }
  0xb1   :  { %1358 = vrot.lane.b32.xlu2 %v1357_v29, %s1484_s2 }
  0xb6   :  { %v160_v31 = vpop.f32.mrf.mxu0 }
  0xb7   :  { %251 = vmatpush.msrb.mxu3 %v160_v31  ;;  %v1382_v49 = vpack.i.bf16 %v1542_v22, %v160_v31 }
  0xb9   :  { %252 = vmatpush.msrb.mxu3 %v157_v28 }
  0xba   :  { %1277 = vmatmul.msk.f32.vlgmr.msrb.gmra.mxu3 %vm79_vm0, %v193_v30 }
  0xbb   :  { %311 = vmatpush.msra.mxu3 %v178_v32  ;;  %v1485_v32 = vmov 1983009808  }
  0xbd   :  { %312 = vmatpush.msra.mxu3 %v175_v25 }
  0xbe   :  { %v163_v33 = vpop.f32.mrf.mxu0 }
  0xbf   :  { %v1332_v34 = vpack.i.bf16 %v163_v33, %v157_v28 }
  0xc1   :  { %1333 = vrot.lane.b32.xlu1 %v1332_v34, %s1483_s0 }
  0xc2   :  { %1280 = vmatmul.msk.f32.vlgmr.msra.gmra.mxu3 %vm79_vm0, %v193_v30 }
  0xc6   :  { %v166_v35 = vpop.f32.mrf.mxu0 }
  0xc7   :  { %v1327_v37 = vpack.i.bf16 %v166_v35, %v160_v31  ;;  %271 = vmatpush.msra.mxu1 %v166_v35 }
  0xc9   :  { %1338 = vrot.lane.b32.xlu1 %v1337_v36, %s1483_s0  ;;  %1328 = vrot.lane.b32.xlu0 %v1327_v37, %s1483_s0 }
  0xca   :  { %272 = vmatpush.msra.mxu1 %v163_v33 }
  0xcb   :  { %1278 = vmatmul.msk.f32.vlgmr.msra.gmra.mxu1 %vm79_vm0, %v193_v30 }
  0xcc   :  { %331 = vmatpush.msrb.mxu1 %v1542_v22 }
  0xce   :  { %332 = vmatpush.msrb.mxu1 %v181_v19  ;;  %v169_v38 = vpop.f32.mrf.mxu0 }
  0xcf   :  { %v1377_v40 = vpack.i.bf16 %v169_v38, %v163_v33  ;;  %v363_v33 = vunpack.c.l.s4 %v1485_v32 }
  0xd1   :  { %1353 = vrot.lane.b32.xlu1 %v1352_v39, %s1484_s2  ;;  %1378 = vrot.lane.b32.xlu2 %v1377_v40, %s1484_s2  ;;  %v1598_v39 = vunpack.c.0.s8 %v363_v33 }
  0xd3   :  { %1281 = vmatmul.msk.f32.vlgmr.msrb.gmra.mxu1 %vm79_vm0, %v193_v30 }
  0xd6   :  { %v172_v43 = vpop.f32.mrf.mxu0 }
  0xd7   :  { %v1372_v44 = vpack.i.bf16 %v172_v43, %v166_v35  ;;  %v1362_v45 = vpack.i.bf16 %v169_v38, %v172_v43  ;;  %291 = vmatpush.msra.mxu2 %v172_v43 }
  0xd9   :  { %1393 = vrot.lane.b32.xlu2 %v1392_v42, %s1484_s2  ;;  %1373 = vrot.lane.b32.xlu1 %v1372_v44, %s1484_s2 }
  0xda   :  { %1363 = vrot.lane.b32.xlu0 %v1362_v45, %s1483_s0  ;;  %292 = vmatpush.msra.mxu2 %v169_v38 }
  0xdb   :  { %1279 = vmatmul.msk.f32.vlgmr.msra.gmra.mxu2 %vm79_vm0, %v193_v30 }
  0xdc   :  { %351 = vmatpush.msrb.mxu2 %v190_v46 }
  0xde   :  { %352 = vmatpush.msrb.mxu2 %v187_v41 }
  0xe1   :  { %1388 = vrot.lane.b32.xlu1 %v1387_v47, %s1484_s2 }
  0xe2   :  { %1368 = vrot.lane.b32.xlu0 %v1367_v48, %s1483_s0 }
  0xe3   :  { %1282 = vmatmul.msk.f32.vlgmr.msrb.gmra.mxu2 %vm79_vm0, %v193_v30 }
  0xea   :  { %1383 = vrot.lane.b32.xlu0 %v1382_v49, %s1484_s2 }
  0xf2   :  { %1398 = vrot.lane.b32.xlu0 %v1397_v50, %s1484_s2 }
  0xfb   :  { %v1344_v55 = vpop.permute.xlu2 %1343 }
  0xfc   :  { %v1346_v63 = vunpack.i.h.bf16 %v1344_v55  ;;  %v1345_v4 = vunpack.i.l.bf16 %v1344_v55 }
 0x103   :  { %v1349_v57 = vpop.permute.xlu2 %1348 }
 0x104   :  { %v1350_v5 = vunpack.i.l.bf16 %v1349_v57  ;;  %v1351_v6 = vunpack.i.h.bf16 %v1349_v57  ;;  %v1486_v57 = vmov 1934713408  }
 0x10b   :  { %v1324_v51 = vpop.permute.xlu0 %1323  ;;  %v1359_v2 = vpop.permute.xlu2 %1358 }
 0x10c   :  { %v1325_v52 = vunpack.i.l.bf16 %v1324_v51  ;;  %v1326_v53 = vunpack.i.h.bf16 %v1324_v51  ;;  %v1361_v10 = vunpack.i.h.bf16 %v1359_v2  ;;  %v1360_v11 = vunpack.i.l.bf16 %v1359_v2 }
 0x10e   :  { %540 = vmatpush.msrb.mxu3 %v1325_v52 }
 0x110   :  { %541 = vmatpush.msrb.mxu3 %v1326_v53 }
 0x111   :  { %1283 = vmatmul.msk.f32.vlgmr.msrb.gmra.mxu3 %vm79_vm0, %v1570_v54 }
 0x117   :  { %v1580_v12 = vpop.f32.mrf.mxu1 }
 0x118   :  { %v360_v43 = vrot.slane %v1580_v12, 4 }
 0x12b   :  { %v1379_v13 = vpop.permute.xlu2 %1378 }
 0x12c   :  { %v1381_v19 = vunpack.i.h.bf16 %v1379_v13  ;;  %v1380_v20 = vunpack.i.l.bf16 %v1379_v13 }
 0x12d   :  { %v234_v29 = vpop.f32.mrf.mxu2 }
 0x12e   :  { %v372_v37 = vrot.slane %v234_v29, 4 }
 0x133   :  { %v1334_v56 = vpop.permute.xlu1 %1333  ;;  %v1394_v24 = vpop.permute.xlu2 %1393 }
 0x134   :  { %v1335_v0 = vunpack.i.l.bf16 %v1334_v56  ;;  %v1336_v1 = vunpack.i.h.bf16 %v1334_v56  ;;  %v1396_v34 = vunpack.i.h.bf16 %v1394_v24  ;;  %v1395_v49 = vunpack.i.l.bf16 %v1394_v24 }
 0x13b   :  { %v1339_v58 = vpop.permute.xlu1 %1338  ;;  %v1329_v59 = vpop.permute.xlu0 %1328 }
 0x13c   :  { %v1340_v60 = vunpack.i.l.bf16 %v1339_v58  ;;  %v1331_v61 = vunpack.i.h.bf16 %v1329_v59  ;;  %v1330_v62 = vunpack.i.l.bf16 %v1329_v59  ;;  %v1341_v3 = vunpack.i.h.bf16 %v1339_v58 }
 0x13d   :  { %v254_v26 = vpop.f32.mrf.mxu3  ;;  %v411_v58 = vunpack.c.l.s4 %v1486_v57 }
 0x13e   :  { %568 = vmatpush.msra.mxu1 %v1340_v60  ;;  %596 = vmatpush.msra.mxu2 %v1330_v62  ;;  %v357_v30 = vrot.slane %v254_v26, 4  ;;  %v361_v56 = vsel %vm358_vm1, %v254_v26, %v360_v43 }
 0x13f   :  { %624 = vmatpush.msra.mxu3 %v1331_v61 }
 0x140   :  { %569 = vmatpush.msra.mxu1 %v1346_v63  ;;  %597 = vmatpush.msra.mxu2 %v1335_v0  ;;  %v359_v38 = vsel %vm358_vm1, %v357_v30, %v1580_v12  ;;  %v369_v0 = vperm.slane %v361_v56, %v1598_v39 }
 0x141   :  { %625 = vmatpush.msra.mxu3 %v1336_v1  ;;  %1285 = vmatmul.msk.f32.vlgmr.msra.gmra.mxu2 %vm79_vm0, %v1570_v54  ;;  %v365_v41 = vperm.slane %v359_v38, %v1598_v39 }
 0x142   :  { %1286 = vmatmul.msk.f32.vlgmr.msra.gmra.mxu3 %vm79_vm0, %v1570_v54  ;;  %680 = vmatpush.msrb.mxu2 %v1341_v3 }
 0x143   :  { %708 = vmatpush.msrb.mxu3 %v1345_v4  ;;  %v1354_v7 = vpop.permute.xlu1 %1353  ;;  %1284 = vmatmul.msk.f32.vlgmr.msra.gmra.mxu1 %vm79_vm0, %v1570_v54 }
 0x144   :  { %v1356_v8 = vunpack.i.h.bf16 %v1354_v7  ;;  %v1355_v9 = vunpack.i.l.bf16 %v1354_v7  ;;  %681 = vmatpush.msrb.mxu2 %v1350_v5 }
 0x145   :  { %709 = vmatpush.msrb.mxu3 %v1351_v6  ;;  %v314_v62 = vpop.f32.mrf.mxu3  ;;  %v1623_v6 = vunpack.c.0.s8 %v411_v58 }
 0x146   :  { %916 = vmatpush.msra.mxu2 %v1355_v9  ;;  %v396_v2 = vrot.slane %v314_v62, 4 }
 0x147   :  { %942 = vmatpush.msra.mxu3 %v1356_v8 }
 0x148   :  { %917 = vmatpush.msra.mxu2 %v1360_v11  ;;  %v274_v23 = vpop.f32.mrf.mxu1 }
 0x149   :  { %943 = vmatpush.msra.mxu3 %v1361_v10  ;;  %1288 = vmatmul.msk.f32.vlgmr.msrb.gmra.mxu2 %vm79_vm0, %v1570_v54  ;;  %v370_v36 = vrot.slane %v274_v23, 4  ;;  %v373_v45 = vsel %vm358_vm1, %v274_v23, %v372_v37 }
 0x14a   :  { %1289 = vmatmul.msk.f32.vlgmr.msrb.gmra.mxu3 %vm79_vm0, %v1570_v54  ;;  %v381_v55 = vperm.slane %v373_v45, %v1598_v39 }
 0x14b   :  { %v1374_v14 = vpop.permute.xlu1 %1373  ;;  %v371_v42 = vsel %vm358_vm1, %v370_v36, %v234_v29 }
 0x14c   :  { %v1376_v15 = vunpack.i.h.bf16 %v1374_v14  ;;  %v1375_v16 = vunpack.i.l.bf16 %v1374_v14  ;;  %v1364_v17 = vpop.permute.xlu0 %1363  ;;  %v377_v51 = vperm.slane %v371_v42, %v1598_v39  ;;  %v418_v1 = vrot.slane %v381_v55, 4 }
 0x14d   :  { %v1365_v18 = vunpack.i.l.bf16 %v1364_v17  ;;  %v1366_v22 = vunpack.i.h.bf16 %v1364_v17 }
 0x14e   :  { %994 = vmatpush.msrb.mxu2 %v1375_v16  ;;  %1020 = vmatpush.msrb.mxu3 %v1376_v15  ;;  %v406_v61 = vrot.slane %v377_v51, 4  ;;  %v419_v15 = vsel %vm358_vm1, %v418_v1, %v369_v0 }
 0x14f   :  { %652 = vmatpush.msrb.mxu1 %v1365_v18  ;;  %v420_v18 = vrot.slane %v369_v0, 4  ;;  %v425_v24 = vperm.slane %v419_v15, %v1623_v6 }
 0x150   :  { %995 = vmatpush.msrb.mxu2 %v1380_v20  ;;  %1021 = vmatpush.msrb.mxu3 %v1381_v19  ;;  %v334_v40 = vpop.f32.mrf.mxu1  ;;  %v407_v10 = vsel %vm358_vm1, %v406_v61, %v365_v41 }
 0x151   :  { %653 = vmatpush.msrb.mxu1 %v1366_v22  ;;  %1292 = vmatmul.msk.f32.vlgmr.msra.gmra.mxu2 %vm79_vm0, %v1586_v21  ;;  %v382_v48 = vrot.slane %v334_v40, 4  ;;  %v1632_v20 = vperm.slane %v407_v10, %v1623_v6  ;;  %v464_v30 = vrot.slane %v425_v24, 4 }
 0x152   :  { %1287 = vmatmul.msk.f32.vlgmr.msrb.gmra.mxu1 %vm79_vm0, %v1570_v54  ;;  %1293 = vmatmul.msk.f32.vlgmr.msra.gmra.mxu3 %vm79_vm0, %v1586_v21 }
 0x153   :  { %v1389_v25 = vpop.permute.xlu1 %1388 }
 0x154   :  { %v1390_v27 = vunpack.i.l.bf16 %v1389_v25  ;;  %v1369_v28 = vpop.permute.xlu0 %1368  ;;  %v1391_v52 = vunpack.i.h.bf16 %v1389_v25 }
 0x155   :  { %v1370_v31 = vunpack.i.l.bf16 %v1369_v28  ;;  %v1371_v35 = vunpack.i.h.bf16 %v1369_v28 }
 0x156   :  { %1098 = vmatpush.msra.mxu3 %v1390_v27 }
 0x157   :  { %736 = vmatpush.msra.mxu1 %v1370_v31  ;;  %v456_v31 = vrot.slane %v1632_v20, 4 }
 0x158   :  { %1099 = vmatpush.msra.mxu3 %v1396_v34 }
 0x159   :  { %737 = vmatpush.msra.mxu1 %v1371_v35  ;;  %1295 = vmatmul.msk.f32.vlgmr.msrb.gmra.mxu2 %vm79_vm0, %v1586_v21  ;;  %v421_v35 = vsel %vm358_vm1, %v381_v55, %v420_v18 }
 0x15a   :  { %1290 = vmatmul.msk.f32.vlgmr.msra.gmra.mxu1 %vm79_vm0, %v1570_v54  ;;  %1296 = vmatmul.msk.f32.vlgmr.msrb.gmra.mxu3 %vm79_vm0, %v1586_v21  ;;  %v408_v54 = vrot.slane %v365_v41, 4  ;;  %v429_v41 = vperm.slane %v421_v35, %v1623_v6 }
 0x15c   :  { %v1384_v44 = vpop.permute.xlu0 %1383  ;;  %v409_v3 = vsel %vm358_vm1, %v377_v51, %v408_v54 }
 0x15d   :  { %v1386_v46 = vunpack.i.h.bf16 %v1384_v44  ;;  %v1385_v47 = vunpack.i.l.bf16 %v1384_v44  ;;  %v417_v11 = vperm.slane %v409_v3, %v1623_v6 }
 0x15e   :  { %v294_v50 = vpop.f32.mrf.mxu2 }
 0x15f   :  { %v384_v53 = vrot.slane %v294_v50, 4  ;;  %968 = vmatpush.msrb.mxu1 %v1385_v47  ;;  %1072 = vmatpush.msra.mxu2 %v1386_v46  ;;  %v383_v59 = vsel %vm358_vm1, %v382_v48, %v294_v50  ;;  %v460_v26 = vrot.slane %v417_v11, 4  ;;  %v468_v48 = vrot.slane %v429_v41, 4 }
 0x160   :  { %v389_v5 = vperm.slane %v383_v59, %v1598_v39 }
 0x161   :  { %969 = vmatpush.msrb.mxu1 %v1391_v52  ;;  %1073 = vmatpush.msra.mxu2 %v1395_v49  ;;  %v385_v60 = vsel %vm358_vm1, %v334_v40, %v384_v53 }
 0x162   :  { %1294 = vmatmul.msk.f32.vlgmr.msrb.gmra.mxu1 %vm79_vm0, %v1586_v21  ;;  %1298 = vmatmul.msk.f32.vlgmr.msra.gmra.mxu2 %vm79_vm0, %v1586_v21  ;;  %v393_v63 = vperm.slane %v385_v60, %v1598_v39  ;;  %v432_v17 = vrot.slane %v389_v5, 4 }
 0x163   :  { %1299 = vmatmul.msk.f32.vlgmr.msra.gmra.mxu3 %vm79_vm0, %v1586_v21 }
 0x164   :  { %v1399_v4 = vpop.permute.xlu0 %1398  ;;  %v444_v9 = vrot.slane %v393_v63, 4 }
 0x165   :  { %v1400_v7 = vunpack.i.l.bf16 %v1399_v4  ;;  %v1401_v12 = vunpack.i.h.bf16 %v1399_v4 }
 0x166   :  { %v354_v8 = vpop.f32.mrf.mxu2 }
 0x167   :  { %v394_v13 = vrot.slane %v354_v8, 4  ;;  %1046 = vmatpush.msra.mxu1 %v1400_v7  ;;  %v397_v14 = vsel %vm358_vm1, %v354_v8, %v396_v2 }
 0x168   :  { %v405_v16 = vperm.slane %v397_v14, %v1598_v39 }
 0x169   :  { %v395_v19 = vsel %vm358_vm1, %v394_v13, %v314_v62  ;;  %1047 = vmatpush.msra.mxu1 %v1401_v12 }
 0x16a   :  { %v401_v22 = vperm.slane %v395_v19, %v1598_v39  ;;  %v442_v23 = vrot.slane %v405_v16, 4  ;;  %1297 = vmatmul.msk.f32.vlgmr.msra.gmra.mxu1 %vm79_vm0, %v1586_v21  ;;  %v445_v25 = vsel %vm358_vm1, %v405_v16, %v444_v9 }
 0x16b   :  { %v453_v33 = vperm.slane %v445_v25, %v1623_v6 }
 0x16c   :  { %v430_v27 = vrot.slane %v401_v22, 4  ;;  %v443_v28 = vsel %vm358_vm1, %v442_v23, %v393_v63  ;;  %v433_v29 = vsel %vm358_vm1, %v401_v22, %v432_v17 }
 0x16d   :  { %v441_v32 = vperm.slane %v433_v29, %v1623_v6  ;;  %v449_v21 = vperm.slane %v443_v28, %v1623_v6  ;;  %v466_v42 = vrot.slane %v453_v33, 4  ;;  %v1665_v49 = vsel %vm358_vm1, %v453_v33, %v468_v48 }
 0x16e   :  { %v431_v34 = vsel %vm358_vm1, %v430_v27, %v389_v5 }
 0x16f   :  { %v1648_v36 = vperm.slane %v431_v34, %v1623_v6  ;;  %v461_v37 = vsel %vm358_vm1, %v441_v32, %v460_v26  ;;  %v465_v38 = vsel %vm358_vm1, %v449_v21, %v464_v30  ;;  %v458_v43 = vrot.slane %v441_v32, 4 }
 0x170   :  { %479 = vrot.lane.b32.xlu0 %v461_v37, %s1487_s28  ;;  %487 = vrot.lane.b32.xlu2 %v465_v38, %s1488_s29  ;;  %v462_v44 = vrot.slane %v449_v21, 4  ;;  %v467_v45 = vsel %vm358_vm1, %v466_v42, %v429_v41 }
 0x171   :  { %v457_v40 = vsel %vm358_vm1, %v1648_v36, %v456_v31  ;;  %v459_v46 = vsel %vm358_vm1, %v458_v43, %v417_v11  ;;  %v454_v17 = vrot.slane %v1648_v36, 4 }
 0x172   :  { %471 = vrot.lane.b32.xlu1 %v457_v40, %s1480_s21  ;;  %v463_v47 = vsel %vm358_vm1, %v462_v44, %v425_v24 }
 0x173   :  { %v455_v40 = vsel %vm358_vm1, %v454_v17, %v1632_v20 }
 0x178   :  { %491 = vrot.lane.b32.xlu0 %v467_v45, %s1489_s30  ;;  %475 = vrot.lane.b32.xlu2 %v459_v46, %s1490_s4 }
 0x17a   :  { %483 = vrot.lane.b32.xlu1 %v463_v47, %s1491_s5 }
 0x194   :  { %v543_v50 = vpop.f32.mrf.mxu3 }
 0x195   :  { %v744_v0 = vrot.slane %v543_v50, 4 }
 0x1c0   :  { %v571_v52 = vpop.f32.mrf.mxu1 }
 0x1c1   :  { %v756_v54 = vrot.slane %v571_v52, 4 }
 0x1c4   :  { %v599_v51 = vpop.f32.mrf.mxu2 }
 0x1c5   :  { %v627_v53 = vpop.f32.mrf.mxu3  ;;  %v742_v55 = vrot.slane %v599_v51, 4  ;;  %v745_v5 = vsel %vm358_vm1, %v599_v51, %v744_v0 }
 0x1c6   :  { %v754_v56 = vrot.slane %v627_v53, 4  ;;  %v757_v57 = vsel %vm358_vm1, %v627_v53, %v756_v54  ;;  %v753_v11 = vperm.slane %v745_v5, %v1598_v39 }
 0x1c7   :  { %v743_v59 = vsel %vm358_vm1, %v742_v55, %v543_v50  ;;  %v765_v62 = vperm.slane %v757_v57, %v1598_v39 }
 0x1c8   :  { %v755_v61 = vsel %vm358_vm1, %v754_v56, %v571_v52  ;;  %v749_v1 = vperm.slane %v743_v59, %v1598_v39  ;;  %v804_v29 = vrot.slane %v753_v11, 4 }
 0x1c9   :  { %v761_v3 = vperm.slane %v755_v61, %v1598_v39  ;;  %v802_v8 = vrot.slane %v765_v62, 4 }
 0x1ca   :  { %v792_v9 = vrot.slane %v749_v1, 4  ;;  %v1694_v37 = vpop.permute.xlu2 %487  ;;  %v805_v50 = vsel %vm358_vm1, %v765_v62, %v804_v29 }
 0x1cb   :  { %v790_v12 = vrot.slane %v761_v3, 4  ;;  %v803_v19 = vsel %vm358_vm1, %v802_v8, %v753_v11 }
 0x1cc   :  { %v683_v58 = vpop.f32.mrf.mxu2  ;;  %v793_v25 = vsel %vm358_vm1, %v761_v3, %v792_v9  ;;  %v1689_v31 = vperm.slane %v803_v19, %v1623_v6 }
 0x1cd   :  { %v711_v60 = vpop.f32.mrf.mxu3  ;;  %v780_v16 = vrot.slane %v683_v58, 4  ;;  %v791_v28 = vsel %vm358_vm1, %v790_v12, %v749_v1  ;;  %v801_v21 = vperm.slane %v793_v25, %v1623_v6  ;;  %v1727_v1 = vperm.slane %v805_v50, %v1623_v6 }
 0x1ce   :  { %v766_v4 = vrot.slane %v711_v60, 4  ;;  %v1697_v38 = vperm.slane %v791_v28, %v1623_v6  ;;  %v848_v47 = vrot.slane %v1689_v31, 4 }
 0x1cf   :  { %v655_v63 = vpop.f32.mrf.mxu1  ;;  %v844_v53 = vrot.slane %v801_v21, 4 }
 0x1d0   :  { %v768_v2 = vrot.slane %v655_v63, 4  ;;  %v767_v13 = vsel %vm358_vm1, %v766_v4, %v655_v63 }
 0x1d1   :  { %v773_v22 = vperm.slane %v767_v13, %v1598_v39 }
 0x1d2   :  { %v769_v7 = vsel %vm358_vm1, %v711_v60, %v768_v2 }
 0x1d3   :  { %v777_v14 = vperm.slane %v769_v7, %v1598_v39  ;;  %v816_v35 = vrot.slane %v773_v22, 4 }
 0x1d4   :  { %v1675_v10 = vpop.f32.mrf.mxu2 }
 0x1d5   :  { %v945_v15 = vpop.f32.mrf.mxu3  ;;  %v828_v26 = vrot.slane %v777_v14, 4  ;;  %v1106_v2 = vrot.slane %v1675_v10, 4 }
 0x1d6   :  { %v1118_v55 = vrot.slane %v945_v15, 4 }
 0x1d7   :  { %v739_v18 = vpop.f32.mrf.mxu1 }
 0x1d8   :  { %v778_v23 = vrot.slane %v739_v18, 4  ;;  %v781_v24 = vsel %vm358_vm1, %v739_v18, %v780_v16 }
 0x1d9   :  { %v789_v27 = vperm.slane %v781_v24, %v1598_v39 }
 0x1da   :  { %v779_v30 = vsel %vm358_vm1, %v778_v23, %v683_v58  ;;  %v840_v58 = vrot.slane %v1697_v38, 4 }
 0x1db   :  { %v785_v32 = vperm.slane %v779_v30, %v1598_v39  ;;  %v826_v33 = vrot.slane %v789_v27, 4  ;;  %v829_v34 = vsel %vm358_vm1, %v789_v27, %v828_v26 }
 0x1dc   :  { %v997_v36 = vpop.f32.mrf.mxu2  ;;  %v1703_v45 = vperm.slane %v829_v34, %v1623_v6 }
 0x1dd   :  { %v814_v41 = vrot.slane %v785_v32, 4  ;;  %v1116_v42 = vrot.slane %v997_v36, 4  ;;  %v1023_v43 = vpop.f32.mrf.mxu3  ;;  %v827_v44 = vsel %vm358_vm1, %v826_v33, %v777_v14  ;;  %v817_v48 = vsel %vm358_vm1, %v785_v32, %v816_v35 }
 0x1de   :  { %v1706_v46 = vperm.slane %v827_v44, %v1623_v6  ;;  %v825_v52 = vperm.slane %v817_v48, %v1623_v6  ;;  %v850_v62 = vrot.slane %v1703_v45, 4  ;;  %v1119_v63 = vsel %vm358_vm1, %v997_v36, %v1118_v55 }
 0x1df   :  { %v1117_v51 = vsel %vm358_vm1, %v1116_v42, %v945_v15  ;;  %v971_v20 = vpop.f32.mrf.mxu1  ;;  %v815_v54 = vsel %vm358_vm1, %v814_v41, %v773_v22  ;;  %v1130_v8 = vrot.slane %v1023_v43, 4  ;;  %v1734_v11 = vperm.slane %v1119_v63, %v1598_v39  ;;  %v476_v22 = vpop.permute.xlu2 %475 }
 0x1e0   :  { %v1123_v56 = vperm.slane %v1117_v51, %v1598_v39  ;;  %v1104_v57 = vrot.slane %v971_v20, 4  ;;  %v849_v59 = vsel %vm358_vm1, %v1706_v46, %v848_v47  ;;  %v845_v60 = vsel %vm358_vm1, %v825_v52, %v844_v53 }
 0x1e1   :  { %v821_v61 = vperm.slane %v815_v54, %v1623_v6  ;;  %871 = vrot.lane.b32.xlu0 %v849_v59, %s1488_s29  ;;  %863 = vrot.lane.b32.xlu2 %v845_v60, %s1487_s28  ;;  %v842_v5 = vrot.slane %v825_v52, 4  ;;  %v1107_v12 = vsel %vm358_vm1, %v971_v20, %v1106_v2  ;;  %v846_v26 = vrot.slane %v1706_v46, 4 }
 0x1e2   :  { %v1105_v0 = vsel %vm358_vm1, %v1104_v57, %v1675_v10  ;;  %v1152_v7 = vrot.slane %v1123_v56, 4  ;;  %v851_v10 = vsel %vm358_vm1, %v850_v62, %v1727_v1  ;;  %v480_v35 = vpop.permute.xlu0 %479  ;;  %v1115_v41 = vperm.slane %v1107_v12, %v1598_v39 }
 0x1e3   :  { %v1111_v3 = vperm.slane %v1105_v0, %v1598_v39  ;;  %v841_v4 = vsel %vm358_vm1, %v821_v61, %v840_v58  ;;  %v838_v15 = vrot.slane %v821_v61, 4  ;;  %v843_v25 = vsel %vm358_vm1, %v842_v5, %v801_v21 }
 0x1e4   :  { %855 = vrot.lane.b32.xlu1 %v841_v4, %s1480_s21  ;;  %v472_v9 = vpop.permute.xlu1 %471  ;;  %v847_v47 = vsel %vm358_vm1, %v846_v26, %v1689_v31  ;;  %v1166_v62 = vrot.slane %v1115_v41, 4 }
 0x1e5   :  { %v1154_v13 = vrot.slane %v1111_v3, 4  ;;  %v1075_v14 = vpop.f32.mrf.mxu2  ;;  %v499_v16 = vsel %vm498_vm2, %v455_v40, %v472_v9  ;;  %v1153_v32 = vsel %vm358_vm1, %v1152_v7, %v1111_v3  ;;  %v1164_v40 = vrot.slane %v1734_v11, 4 }
 0x1e6   :  { %v1128_v17 = vrot.slane %v1075_v14, 4  ;;  %v1131_v18 = vsel %vm358_vm1, %v1075_v14, %v1130_v8  ;;  %v1101_v19 = vpop.f32.mrf.mxu3  ;;  %v500_v34 = vsel %vm79_vm0, %v499_v16, %v476_v22  ;;  %v1159_v48 = vperm.slane %v1153_v32, %v1623_v6 }
 0x1e7   :  { %v1140_v23 = vrot.slane %v1101_v19, 4  ;;  %v1049_v24 = vpop.f32.mrf.mxu1  ;;  %v1155_v27 = vsel %vm358_vm1, %v1123_v56, %v1154_v13  ;;  %v1139_v29 = vperm.slane %v1131_v18, %v1598_v39  ;;  %v502_v51 = vsel %vm501_vm3, %v500_v34, %v480_v35 }
 0x1e8   :  { %v1129_v28 = vsel %vm358_vm1, %v1128_v17, %v1023_v43  ;;  %v1142_v30 = vrot.slane %v1049_v24, 4  ;;  %v1163_v21 = vperm.slane %v1155_v27, %v1623_v6  ;;  %v839_v53 = vsel %vm358_vm1, %v838_v15, %v1697_v38 }
 0x1e9   :  { %v1135_v33 = vperm.slane %v1129_v28, %v1598_v39  ;;  %v1141_v36 = vsel %vm358_vm1, %v1140_v23, %v1049_v24  ;;  %859 = vrot.lane.b32.xlu0 %v843_v25, %s1490_s4  ;;  %875 = vrot.lane.b32.xlu2 %v851_v10, %s1489_s30  ;;  %v1190_v50 = vrot.slane %v1139_v29, 4  ;;  %v1202_v61 = vrot.slane %v1159_v48, 4 }
 0x1ea   :  { %v1143_v42 = vsel %vm358_vm1, %v1101_v19, %v1142_v30  ;;  %v1147_v43 = vperm.slane %v1141_v36, %v1598_v39  ;;  %v1206_v56 = vrot.slane %v1163_v21, 4  ;;  %v1165_v7 = vsel %vm358_vm1, %v1164_v40, %v1115_v41  ;;  %v492_v25 = vpop.permute.xlu0 %491 }
 0x1eb   :  { %v1178_v44 = vrot.slane %v1135_v33, 4  ;;  %v1151_v46 = vperm.slane %v1143_v42, %v1598_v39  ;;  %v1167_v9 = vsel %vm358_vm1, %v1734_v11, %v1166_v62  ;;  %v1171_v13 = vperm.slane %v1165_v7, %v1623_v6 }
 0x1ec   :  { %v1176_v20 = vrot.slane %v1147_v43, 4  ;;  %867 = vrot.lane.b32.xlu1 %v847_v47, %s1491_s5  ;;  %v484_v52 = vpop.permute.xlu1 %483  ;;  %v1175_v10 = vperm.slane %v1167_v9, %v1623_v6  ;;  %v852_v19 = vrot.slane %v1727_v1, 4 }
 0x1ed   :  { %v1188_v54 = vrot.slane %v1151_v46, 4  ;;  %v504_v55 = vsel %vm503_vm4, %v502_v51, %v484_v52  ;;  %v1179_v39 = vsel %vm358_vm1, %v1147_v43, %v1178_v44  ;;  %v1191_v59 = vsel %vm358_vm1, %v1151_v46, %v1190_v50 }
 0x1ee   :  { %v1769_v31 = vsel %vm505_vm5, %v504_v55, %v1694_v37  ;;  %v1187_v57 = vperm.slane %v1179_v39, %v1623_v6  ;;  %v1177_v58 = vsel %vm358_vm1, %v1176_v20, %v1135_v33  ;;  %v1199_v37 = vperm.slane %v1191_v59, %v1623_v6 }
 0x1ef   :  { %v1183_v60 = vperm.slane %v1177_v58, %v1623_v6  ;;  %v1189_v38 = vsel %vm358_vm1, %v1188_v54, %v1139_v29  ;;  %v1210_v17 = vrot.slane %v1171_v13, 4  ;;  %v1214_v11 = vrot.slane %v1175_v10, 4 }
 0x1f0   :  { %v1207_v63 = vsel %vm358_vm1, %v1187_v57, %v1206_v56  ;;  %v1204_v0 = vrot.slane %v1187_v57, 4  ;;  %v1195_v4 = vperm.slane %v1189_v38, %v1623_v6  ;;  %v1212_v12 = vrot.slane %v1199_v37, 4 }
 0x1f1   :  { %v1200_v2 = vrot.slane %v1183_v60, 4  ;;  %v1203_v3 = vsel %vm358_vm1, %v1183_v60, %v1202_v61  ;;  %1225 = vrot.lane.b32.xlu0 %v1207_v63, %s1487_s28  ;;  %v1215_v22 = vsel %vm358_vm1, %v1199_v37, %v1214_v11  ;;  %v853_v6 = vsel %vm358_vm1, %v1703_v45, %v852_v19 }
 0x1f2   :  { %1217 = vrot.lane.b32.xlu2 %v1203_v3, %s1480_s21  ;;  %v1205_v5 = vsel %vm358_vm1, %v1204_v0, %v1163_v21  ;;  %v1208_v14 = vrot.slane %v1195_v4, 4  ;;  %v1213_v15 = vsel %vm358_vm1, %v1212_v12, %v1175_v10  ;;  %v1211_v18 = vsel %vm358_vm1, %v1195_v4, %v1210_v17 }
 0x1f3   :  { %v1201_v8 = vsel %vm358_vm1, %v1200_v2, %v1159_v48 }
 0x1f4   :  { %1221 = vrot.lane.b32.xlu1 %v1205_v5, %s1490_s4  ;;  %v1209_v16 = vsel %vm358_vm1, %v1208_v14, %v1171_v13 }
 0x1f9   :  { %1237 = vrot.lane.b32.xlu0 %v1213_v15, %s1489_s30 }
 0x1fa   :  { %1229 = vrot.lane.b32.xlu2 %v1209_v16, %s1491_s5 }
 0x1fc   :  { %1233 = vrot.lane.b32.xlu1 %v1211_v18, %s1488_s29 }
 0x201   :  { %1241 = vrot.lane.b32.xlu0 %v1215_v22, %s1492_s6 }
 0x202   :  { %879 = vrot.lane.b32.xlu2 %v853_v6, %s1492_s6 }
 0x204   :  { %495 = vrot.lane.b32.xlu1 %v1665_v49, %s1492_s6 }
 0x23b   :  { %v864_v23 = vpop.permute.xlu2 %863 }
 0x243   :  { %v876_v24 = vpop.permute.xlu2 %875 }
 0x24c   :  { %v1218_v26 = vpop.permute.xlu2 %1217 }
 0x24d   :  { %v1244_v42 = vsel %vm498_vm2, %v1201_v8, %v1218_v26 }
 0x253   :  { %v872_v27 = vpop.permute.xlu0 %871 }
 0x254   :  { %v1230_v29 = vpop.permute.xlu2 %1229 }
 0x256   :  { %v856_v28 = vpop.permute.xlu1 %855 }
 0x257   :  { %v882_v30 = vsel %vm498_vm2, %v839_v53, %v856_v28  ;;  %v508_v53 = vsel %vm507_vm7, %v1769_v31, %v492_v25 }
 0x25b   :  { %v860_v1 = vpop.permute.xlu0 %859 }
 0x25c   :  { %v883_v32 = vsel %vm79_vm0, %v882_v30, %v860_v1  ;;  %v880_v35 = vpop.permute.xlu2 %879 }
 0x25d   :  { %v884_v33 = vsel %vm501_vm3, %v883_v32, %v864_v23 }
 0x25e   :  { %v868_v45 = vpop.permute.xlu1 %867 }
 0x25f   :  { %v885_v34 = vsel %vm503_vm4, %v884_v33, %v868_v45 }
 0x260   :  { %v886_v49 = vsel %vm505_vm5, %v885_v34, %v872_v27 }
 0x261   :  { %v887_v36 = vsel %vm507_vm7, %v886_v49, %v876_v24 }
 0x262   :  { %v888_v21 = vsel %vm509_vm6, %v887_v36, %v880_v35 }
 0x263   :  { %1291 = vst.msk [vmem:[%s1833_s3 + $0x8] sm:$0xff] %vm511_vm8, %v888_v21  ;;  %v1226_v40 = vpop.permute.xlu0 %1225 }
 0x266   :  { %v1222_v41 = vpop.permute.xlu1 %1221 }
 0x267   :  { %v1245_v43 = vsel %vm79_vm0, %v1244_v42, %v1222_v41 }
 0x268   :  { %v1246_v46 = vsel %vm501_vm3, %v1245_v43, %v1226_v40 }
 0x269   :  { %v1247_v48 = vsel %vm503_vm4, %v1246_v46, %v1230_v29 }
 0x26b   :  { %v1238_v44 = vpop.permute.xlu0 %1237 }
 0x26e   :  { %v1234_v47 = vpop.permute.xlu1 %1233 }
 0x26f   :  { %v1248_v50 = vsel %vm505_vm5, %v1247_v48, %v1234_v47 }
 0x270   :  { %v1249_v20 = vsel %vm507_vm7, %v1248_v50, %v1238_v44 }
 0x273   :  { %v1242_v51 = vpop.permute.xlu0 %1241 }
 0x274   :  { %v1250_v52 = vsel %vm509_vm6, %v1249_v20, %v1242_v51 }
 0x275   :  { %1300 = vst.msk [vmem:[%s1833_s3 + $0x10] sm:$0xff] %vm511_vm8, %v1250_v52 }
 0x276   :  { %v496_v54 = vpop.permute.xlu1 %495 }
 0x277   :  { %v510_v55 = vsel %vm509_vm6, %v508_v53, %v496_v54 }
 0x278   :  { %512 = vst.msk [vmem:[%s1833_s3] sm:$0xff] %vm511_vm8, %v510_v55 }
 0x279   :  { %1257 = vsyncpa [#allocation3], 1 }
 0x27a   :  { %1258 = vsyncpa [#allocation5], 1 }

// kernel: _gdatt_core.3
= control target key start
LH: loop header
LB: loop body
LE: loop exit
PB: predicated region body
PF: predicated region fallthrough
CT: control target
= control target key end

     0   :  { %vm63_vm0 = vcmask 64512   ;;  %vm273_vm1 = vcmask 1047556   ;;  %s1589_s17 = smov 32   ;;  %s1590_s18 = smov 16   ;;  %vm443_vm2 = vcmask 130048   ;;  %vm446_vm3 = vcmask 195584   ;;  %s1968_s0 = inlined_call_operand.vmem [shape: f32[3,8,8,8], index: 0, kind: input, shape index: {}]   ;;  %s1969_s1 = inlined_call_operand.vmem [shape: f32[3,8,8], index: 1, kind: input, shape index: {}]   ;;  %s1970_s2 = inlined_call_operand.vmem [shape: f32[8,64], index: 2, kind: output, shape index: {}]  }
   0x1   :  { %v11_v0 = vld [vmem:[%s1969_s1] sm:$0xff]  ;;  %v25_v1 = vld [vmem:[%s1968_s0 + $0x10] sm:$0xff]  ;;  %v12_v2 = vld [vmem:[%s1969_s1 + $0x8] sm:$0xff]  ;;  %s1591_s19 = smov 40   ;;  %s1592_s20 = smov 48   ;;  %vm449_vm4 = vcmask 261120  }
   0x2   :  { %v14_v3 = vand.u32 2147483647, %v11_v0  ;;  %1485 = vmatpush.xpose.msk.msra.mxu2 %vm63_vm0, %v25_v1  ;;  %v26_v4 = vld [vmem:[%s1968_s0 + $0x18] sm:$0xff]  ;;  %v23_v5 = vld [vmem:[%s1968_s0] sm:$0xff]  ;;  %v24_v6 = vld [vmem:[%s1968_s0 + $0x8] sm:$0xff]  ;;  %s1593_s21 = smov 56  }
   0x3   :  { %1487 = vmatpush.xpose.msk.msra.mxu3 %vm63_vm0, %v26_v4  ;;  %1481 = vmatpush.xpose.msk.msra.mxu0 %vm63_vm0, %v23_v5  ;;  %v30_v7 = vld [vmem:[%s1968_s0 + $0x38] sm:$0xff]  ;;  %v29_v8 = vld [vmem:[%s1968_s0 + $0x30] sm:$0xff]  ;;  %v28_v9 = vld [vmem:[%s1968_s0 + $0x28] sm:$0xff]  ;;  %v15_v11 = vand.u32 2147483647, %v12_v2  ;;  %s1594_s22 = smov 24  }
   0x4   :  { %1561 = vlog2.f32 %v14_v3  ;;  %1483 = vmatpush.xpose.msk.msra.mxu1 %vm63_vm0, %v24_v6  ;;  %v27_v10 = vld [vmem:[%s1968_s0 + $0x20] sm:$0xff]  ;;  %v1500_v32 = vld [vmem:[%s1968_s0 + $0x58] sm:$0xff]  ;;  %v1499_v33 = vld [vmem:[%s1968_s0 + $0x50] sm:$0xff]  ;;  %s1595_s23 = smov 8   ;;  %vm452_vm5 = vcmask 326656   ;;  %vm455_vm6 = vcmask 392192  }
   0x5   :  { %1563 = vlog2.f32 %v15_v11  ;;  %v1497_v25 = vld [vmem:[%s1968_s0 + $0x40] sm:$0xff]  ;;  %v1498_v34 = vld [vmem:[%s1968_s0 + $0x48] sm:$0xff]  ;;  %v1503_v48 = vld [vmem:[%s1968_s0 + $0x70] sm:$0xff]  ;;  %vm458_vm7 = vcmask 457728   ;;  %vm909_vm8 = vcmask 523264   ;;  %vm894_vm9 = vcmask 519168  }
   0x6   :  { %1493 = vmatpush.xpose.msk.msrb.mxu2 %vm63_vm0, %v29_v8  ;;  %v1501_v44 = vld [vmem:[%s1968_s0 + $0x60] sm:$0xff]  ;;  %v1504_v49 = vld [vmem:[%s1968_s0 + $0x78] sm:$0xff]  ;;  %v1502_v50 = vld [vmem:[%s1968_s0 + $0x68] sm:$0xff]  ;;  %vm1006_vm11 = vcmask 27648  }
   0x7   :  { %1495 = vmatpush.xpose.msk.msrb.mxu3 %vm63_vm0, %v30_v7  ;;  %1489 = vmatpush.xpose.msk.msrb.mxu0 %vm63_vm0, %v27_v10 }
   0x8   :  { %1491 = vmatpush.xpose.msk.msrb.mxu1 %vm63_vm0, %v28_v9 }
   0xa   :  { %v1562_v12 = vpop.eup %1561 }
   0xb   :  { %v18_v13 = vmul.f32 0.6931472, %v1562_v12  ;;  %v1564_v26 = vpop.eup %1563 }
   0xc   :  { %v20_v37 = vmul.f32 0.6931472, %v1564_v26 }
   0xd   :  { %v33_v14 = vrot.slane %v18_v13, 2  ;;  %v34_v15 = vrot.slane %v18_v13, 3  ;;  %v39_v16 = vperm.slane %v18_v13, 0  ;;  %v32_v17 = vrot.slane %v18_v13, 1 }
   0xe   :  { %v38_v18 = vrot.slane %v18_v13, 7  ;;  %v37_v19 = vrot.slane %v18_v13, 6  ;;  %v35_v20 = vrot.slane %v18_v13, 4  ;;  %v36_v27 = vrot.slane %v18_v13, 5 }
   0xf   :  { %v41_v21 = vperm.slane %v33_v14, 0  ;;  %v42_v22 = vperm.slane %v34_v15, 0  ;;  %v55_v23 = vmul.f32 %v39_v16, %v23_v5  ;;  %v40_v24 = vperm.slane %v32_v17, 0 }
  0x10   :  { %v43_v31 = vperm.slane %v35_v20, 0  ;;  %v46_v35 = vperm.slane %v38_v18, 0  ;;  %v45_v36 = vperm.slane %v37_v19, 0  ;;  %v44_v38 = vperm.slane %v36_v27, 0 }
  0x11   :  { %v57_v28 = vmul.f32 %v41_v21, %v25_v1  ;;  %v58_v29 = vmul.f32 %v42_v22, %v26_v4  ;;  %v56_v30 = vmul.f32 %v40_v24, %v24_v6  ;;  %1482 = vmatmul.msk.f32.vlgmr.msra.gmra.mxu0 %vm63_vm0, %v55_v23  ;;  %v473_v42 = vrot.slane %v20_v37, 3 }
  0x12   :  { %1505 = vmatpush.xpose.msk.msra.mxu0 %vm63_vm0, %v1497_v25  ;;  %v59_v39 = vmul.f32 %v43_v31, %v27_v10  ;;  %v62_v40 = vmul.f32 %v46_v35, %v30_v7  ;;  %v61_v41 = vmul.f32 %v45_v36, %v29_v8  ;;  %v472_v43 = vrot.slane %v20_v37, 2 }
  0x13   :  { %1486 = vmatmul.msk.f32.vlgmr.msra.gmra.mxu2 %vm63_vm0, %v57_v28  ;;  %1488 = vmatmul.msk.f32.vlgmr.msra.gmra.mxu3 %vm63_vm0, %v58_v29  ;;  %v60_v45 = vmul.f32 %v44_v38, %v28_v9  ;;  %v471_v46 = vrot.slane %v20_v37, 1  ;;  %v478_v47 = vperm.slane %v20_v37, 0  ;;  %v481_v51 = vperm.slane %v473_v42, 0 }
  0x14   :  { %1484 = vmatmul.msk.f32.vlgmr.msra.gmra.mxu1 %vm63_vm0, %v56_v30  ;;  %1511 = vmatpush.xpose.msk.msra.mxu3 %vm63_vm0, %v1500_v32  ;;  %v480_v52 = vperm.slane %v472_v43, 0  ;;  %v474_v55 = vrot.slane %v20_v37, 4  ;;  %v476_v58 = vrot.slane %v20_v37, 6  ;;  %v477_v59 = vrot.slane %v20_v37, 7 }
  0x15   :  { %1509 = vmatpush.xpose.msk.msra.mxu2 %vm63_vm0, %v1499_v33  ;;  %1507 = vmatpush.xpose.msk.msra.mxu1 %vm63_vm0, %v1498_v34  ;;  %v479_v53 = vperm.slane %v471_v46, 0  ;;  %v494_v54 = vmul.f32 %v1497_v25, %v478_v47  ;;  %v497_v56 = vmul.f32 %v1500_v32, %v481_v51  ;;  %v475_v61 = vrot.slane %v20_v37, 5 }
  0x16   :  { %v496_v57 = vmul.f32 %v1499_v33, %v480_v52  ;;  %v482_v62 = vperm.slane %v474_v55, 0  ;;  %v484_v63 = vperm.slane %v476_v58, 0  ;;  %v485_v0 = vperm.slane %v477_v59, 0 }
  0x17   :  { %v495_v60 = vmul.f32 %v1498_v34, %v479_v53  ;;  %v483_v1 = vperm.slane %v475_v61, 0  ;;  %v1587_v7 = vmov 1983009808   ;;  %v1588_v13 = vmov 1934713408  }
  0x18   :  { %v498_v2 = vmul.f32 %v1501_v44, %v482_v62  ;;  %v500_v3 = vmul.f32 %v1503_v48, %v484_v63  ;;  %v501_v4 = vmul.f32 %v1504_v49, %v485_v0  ;;  %v278_v8 = vunpack.c.l.s4 %v1587_v7 }
  0x19   :  { %1490 = vmatmul.msk.f32.vlgmr.msrb.gmra.mxu0 %vm63_vm0, %v59_v39  ;;  %v499_v5 = vmul.f32 %v1502_v50, %v483_v1  ;;  %v302_v14 = vunpack.c.l.s4 %v1588_v13 }
  0x1a   :  { %1513 = vmatpush.xpose.msk.msrb.mxu0 %vm63_vm0, %v1501_v44  ;;  %v1697_v12 = vunpack.c.0.s8 %v278_v8 }
  0x1b   :  { %1496 = vmatmul.msk.f32.vlgmr.msrb.gmra.mxu3 %vm63_vm0, %v62_v40  ;;  %1494 = vmatmul.msk.f32.vlgmr.msrb.gmra.mxu2 %vm63_vm0, %v61_v41  ;;  %v1705_v27 = vunpack.c.0.s8 %v302_v14 }
  0x1c   :  { %1492 = vmatmul.msk.f32.vlgmr.msrb.gmra.mxu1 %vm63_vm0, %v60_v45  ;;  %1517 = vmatpush.xpose.msk.msrb.mxu2 %vm63_vm0, %v1503_v48 }
  0x1d   :  { %1519 = vmatpush.xpose.msk.msrb.mxu3 %vm63_vm0, %v1504_v49  ;;  %1515 = vmatpush.xpose.msk.msrb.mxu1 %vm63_vm0, %v1502_v50 }
  0x21   :  { %1506 = vmatmul.msk.f32.vlgmr.msra.gmra.mxu0 %vm63_vm0, %v494_v54 }
  0x23   :  { %1512 = vmatmul.msk.f32.vlgmr.msra.gmra.mxu3 %vm63_vm0, %v497_v56  ;;  %1510 = vmatmul.msk.f32.vlgmr.msra.gmra.mxu2 %vm63_vm0, %v496_v57 }
  0x24   :  { %1508 = vmatmul.msk.f32.vlgmr.msra.gmra.mxu1 %vm63_vm0, %v495_v60 }
  0x29   :  { %1514 = vmatmul.msk.f32.vlgmr.msrb.gmra.mxu0 %vm63_vm0, %v498_v2 }
  0x2b   :  { %1518 = vmatmul.msk.f32.vlgmr.msrb.gmra.mxu2 %vm63_vm0, %v500_v3  ;;  %1520 = vmatmul.msk.f32.vlgmr.msrb.gmra.mxu3 %vm63_vm0, %v501_v4 }
  0x2c   :  { %1516 = vmatmul.msk.f32.vlgmr.msrb.gmra.mxu1 %vm63_vm0, %v499_v5 }
  0x8e   :  { %v87_v6 = vpop.f32.mrf.mxu0 }
  0x8f   :  { %v275_v10 = vrot.slane %v87_v6, 4 }
  0x91   :  { %v113_v9 = vpop.f32.mrf.mxu1 }
  0x92   :  { %v287_v11 = vrot.slane %v113_v9, 4 }
  0x96   :  { %v139_v15 = vpop.f32.mrf.mxu2  ;;  %v165_v16 = vpop.f32.mrf.mxu3 }
  0x97   :  { %v272_v17 = vrot.slane %v139_v15, 4  ;;  %v276_v18 = vsel %vm273_vm1, %v139_v15, %v275_v10  ;;  %v285_v19 = vrot.slane %v165_v16, 4  ;;  %v288_v20 = vsel %vm273_vm1, %v165_v16, %v287_v11  ;;  %v191_v23 = vpop.f32.mrf.mxu0 }
  0x98   :  { %v284_v21 = vperm.slane %v276_v18, %v1697_v12  ;;  %v296_v22 = vperm.slane %v288_v20, %v1697_v12  ;;  %v331_v32 = vrot.slane %v191_v23, 4 }
  0x99   :  { %v274_v24 = vsel %vm273_vm1, %v272_v17, %v87_v6  ;;  %v286_v25 = vsel %vm273_vm1, %v285_v19, %v113_v9  ;;  %v217_v26 = vpop.f32.mrf.mxu1 }
  0x9a   :  { %v280_v28 = vperm.slane %v274_v24, %v1697_v12  ;;  %v311_v29 = vrot.slane %v284_v21, 4  ;;  %v309_v30 = vrot.slane %v296_v22, 4  ;;  %v343_v31 = vrot.slane %v217_v26, 4 }
  0x9b   :  { %v292_v34 = vperm.slane %v286_v25, %v1697_v12 }
  0x9c   :  { %v310_v33 = vsel %vm273_vm1, %v309_v30, %v284_v21  ;;  %v299_v35 = vrot.slane %v280_v28, 4  ;;  %v312_v36 = vsel %vm273_vm1, %v296_v22, %v311_v29 }
  0x9d   :  { %v316_v37 = vperm.slane %v310_v33, %v1705_v27  ;;  %v320_v44 = vperm.slane %v312_v36, %v1705_v27  ;;  %v297_v49 = vrot.slane %v292_v34, 4 }
  0x9e   :  { %v269_v38 = vpop.f32.mrf.mxu3  ;;  %v300_v39 = vsel %vm273_vm1, %v292_v34, %v299_v35  ;;  %v243_v40 = vpop.f32.mrf.mxu2 }
  0x9f   :  { %411 = vrot.lane.b32.xlu1 %v316_v37, %s1589_s17  ;;  %v344_v41 = vsel %vm273_vm1, %v269_v38, %v343_v31  ;;  %v308_v42 = vperm.slane %v300_v39, %v1705_v27  ;;  %v325_v43 = vrot.slane %v316_v37, 4  ;;  %v341_v45 = vrot.slane %v269_v38, 4  ;;  %v525_v62 = vpop.f32.mrf.mxu0 }
  0xa0   :  { %v352_v46 = vperm.slane %v344_v41, %v1697_v12  ;;  %v329_v47 = vrot.slane %v243_v40, 4  ;;  %v332_v48 = vsel %vm273_vm1, %v243_v40, %v331_v32  ;;  %v327_v57 = vrot.slane %v320_v44, 4 }
  0xa1   :  { %395 = vrot.lane.b32.xlu0 %v308_v42, %s1590_s18  ;;  %v326_v50 = vsel %vm273_vm1, 0.0, %v325_v43  ;;  %v340_v51 = vperm.slane %v332_v48, %v1697_v12  ;;  %v551_v54 = vpop.f32.mrf.mxu1  ;;  %v342_v56 = vsel %vm273_vm1, %v341_v45, %v217_v26  ;;  %v298_v59 = vsel %vm273_vm1, %v297_v49, %v280_v28 }
  0xa2   :  { %v365_v52 = vrot.slane %v352_v46, 4  ;;  %419 = vrot.lane.b32.xlu2 %v326_v50, %s1591_s19  ;;  %v330_v53 = vsel %vm273_vm1, %v329_v47, %v191_v23  ;;  %v724_v60 = vrot.slane %v551_v54, 4  ;;  %v348_v0 = vperm.slane %v342_v56, %v1697_v12 }
  0xa3   :  { %v336_v55 = vperm.slane %v330_v53, %v1697_v12  ;;  %v328_v2 = vsel %vm273_vm1, 0.0, %v327_v57  ;;  %v1733_v3 = vperm.slane %v298_v59, %v1705_v27  ;;  %v712_v4 = vrot.slane %v525_v62, 4 }
  0xa4   :  { %v366_v58 = vsel %vm273_vm1, %v365_v52, %v340_v51  ;;  %v323_v6 = vrot.slane %v308_v42, 4  ;;  %v367_v7 = vrot.slane %v340_v51, 4  ;;  %v353_v22 = vrot.slane %v348_v0, 4 }
  0xa5   :  { %v372_v61 = vperm.slane %v366_v58, %v1705_v27  ;;  %v355_v1 = vrot.slane %v336_v55, 4  ;;  %v321_v10 = vrot.slane %v1733_v3, 4 }
  0xa6   :  { %v603_v63 = vpop.f32.mrf.mxu3  ;;  %v577_v8 = vpop.f32.mrf.mxu2  ;;  %v324_v15 = vsel %vm273_vm1, 0.0, %v323_v6  ;;  %v368_v17 = vsel %vm273_vm1, %v352_v46, %v367_v7  ;;  %v354_v31 = vsel %vm273_vm1, %v353_v22, %v336_v55 }
  0xa7   :  { %427 = vrot.lane.b32.xlu1 %v320_v44, %s1592_s20  ;;  %v725_v5 = vsel %vm273_vm1, %v603_v63, %v724_v60  ;;  %v356_v9 = vsel %vm273_vm1, %v348_v0, %v355_v1  ;;  %v722_v13 = vrot.slane %v603_v63, 4  ;;  %v713_v14 = vsel %vm273_vm1, %v577_v8, %v712_v4  ;;  %v629_v42 = vpop.f32.mrf.mxu0 }
  0xa8   :  { %v733_v11 = vperm.slane %v725_v5, %v1697_v12  ;;  %v364_v16 = vperm.slane %v356_v9, %v1705_v27  ;;  %v322_v18 = vsel %vm273_vm1, 0.0, %v321_v10  ;;  %v381_v20 = vrot.slane %v372_v61, 4 }
  0xa9   :  { %435 = vrot.lane.b32.xlu0 %v328_v2, %s1593_s21  ;;  %v721_v21 = vperm.slane %v713_v14, %v1697_v12  ;;  %v723_v23 = vsel %vm273_vm1, %v722_v13, %v551_v54  ;;  %v376_v24 = vperm.slane %v368_v17, %v1705_v27  ;;  %v710_v25 = vrot.slane %v577_v8, 4  ;;  %v655_v53 = vpop.f32.mrf.mxu1 }
  0xaa   :  { %413 = vrot.lane.b32.xlu2 %v372_v61, %s1589_s17  ;;  %v746_v19 = vrot.slane %v733_v11, 4  ;;  %v729_v26 = vperm.slane %v723_v23, %v1697_v12  ;;  %v382_v28 = vsel %vm273_vm1, 0.0, %v381_v20  ;;  %v1760_v36 = vperm.slane %v354_v31, %v1705_v27 }
  0xab   :  { %v383_v30 = vrot.slane %v376_v24, 4  ;;  %v711_v32 = vsel %vm273_vm1, %v710_v25, %v525_v62  ;;  %v379_v39 = vrot.slane %v364_v16, 4  ;;  %v748_v54 = vrot.slane %v721_v21, 4 }
  0xac   :  { %v747_v29 = vsel %vm273_vm1, %v746_v19, %v721_v21  ;;  %v734_v35 = vrot.slane %v729_v26, 4  ;;  %v717_v38 = vperm.slane %v711_v32, %v1697_v12  ;;  %v377_v44 = vrot.slane %v1760_v36, 4 }
  0xad   :  { %v753_v33 = vperm.slane %v747_v29, %v1705_v27  ;;  %v384_v37 = vsel %vm273_vm1, 0.0, %v383_v30  ;;  %v380_v46 = vsel %vm273_vm1, 0.0, %v379_v39  ;;  %v780_v58 = vrot.slane %v655_v53, 4 }
  0xae   :  { %v681_v34 = vpop.f32.mrf.mxu2  ;;  %v707_v43 = vpop.f32.mrf.mxu3  ;;  %v735_v45 = vsel %vm273_vm1, %v734_v35, %v717_v38  ;;  %v736_v51 = vrot.slane %v717_v38, 4  ;;  %v378_v52 = vsel %vm273_vm1, 0.0, %v377_v44  ;;  %v749_v62 = vsel %vm273_vm1, %v733_v11, %v748_v54 }
  0xaf   :  { %403 = vrot.lane.b32.xlu1 %v324_v15, %s1594_s22  ;;  %v766_v40 = vrot.slane %v681_v34, 4  ;;  %v762_v41 = vrot.slane %v753_v33, 4  ;;  %v778_v48 = vrot.slane %v707_v43, 4  ;;  %v1773_v50 = vperm.slane %v735_v45, %v1705_v27 }
  0xb0   :  { %v737_v59 = vsel %vm273_vm1, %v729_v26, %v736_v51  ;;  %v768_v1 = vrot.slane %v629_v42, 4  ;;  %v781_v2 = vsel %vm273_vm1, %v707_v43, %v780_v58  ;;  %v757_v4 = vperm.slane %v749_v62, %v1705_v27 }
  0xb1   :  { %387 = vrot.lane.b32.xlu0 %v322_v18, %s1595_s23  ;;  %v767_v47 = vsel %vm273_vm1, %v766_v40, %v629_v42  ;;  %v763_v49 = vsel %vm273_vm1, 0.0, %v762_v41  ;;  %v779_v56 = vsel %vm273_vm1, %v778_v48, %v655_v53  ;;  %v758_v57 = vrot.slane %v1773_v50, 4 }
  0xb2   :  { %397 = vrot.lane.b32.xlu2 %v364_v16, %s1590_s18  ;;  %v773_v55 = vperm.slane %v767_v47, %v1697_v12  ;;  %v785_v61 = vperm.slane %v779_v56, %v1697_v12  ;;  %v745_v63 = vperm.slane %v737_v59, %v1705_v27  ;;  %v789_v6 = vperm.slane %v781_v2, %v1697_v12 }
  0xb3   :  { %v759_v0 = vsel %vm273_vm1, 0.0, %v758_v57  ;;  %v769_v7 = vsel %vm273_vm1, %v681_v34, %v768_v1  ;;  %v764_v8 = vrot.slane %v757_v4, 4 }
  0xb4   :  { %v792_v60 = vrot.slane %v773_v55, 4  ;;  %v760_v10 = vrot.slane %v745_v63, 4  ;;  %v777_v11 = vperm.slane %v769_v7, %v1697_v12  ;;  %v802_v13 = vrot.slane %v789_v6, 4 }
  0xb5   :  { %v790_v14 = vrot.slane %v785_v61, 4  ;;  %v765_v15 = vsel %vm273_vm1, 0.0, %v764_v8 }
  0xb6   :  { %v793_v5 = vsel %vm273_vm1, %v785_v61, %v792_v60  ;;  %v761_v17 = vsel %vm273_vm1, 0.0, %v760_v10  ;;  %v803_v18 = vsel %vm273_vm1, %v802_v13, %v777_v11 }
  0xb7   :  { %421 = vrot.lane.b32.xlu1 %v382_v28, %s1591_s19  ;;  %v801_v9 = vperm.slane %v793_v5, %v1705_v27  ;;  %v791_v19 = vsel %vm273_vm1, %v790_v14, %v773_v55  ;;  %v809_v21 = vperm.slane %v803_v18, %v1705_v27 }
  0xb8   :  { %v1806_v22 = vperm.slane %v791_v19, %v1705_v27 }
  0xb9   :  { %429 = vrot.lane.b32.xlu0 %v376_v24, %s1592_s20  ;;  %v816_v16 = vrot.slane %v801_v9, 4  ;;  %v818_v23 = vrot.slane %v809_v21, 4  ;;  %v804_v24 = vrot.slane %v777_v11, 4 }
  0xba   :  { %437 = vrot.lane.b32.xlu2 %v384_v37, %s1593_s21  ;;  %v814_v25 = vrot.slane %v1806_v22, 4 }
  0xbb   :  { %v817_v20 = vsel %vm273_vm1, 0.0, %v816_v16  ;;  %v819_v26 = vsel %vm273_vm1, 0.0, %v818_v23  ;;  %v805_v28 = vsel %vm273_vm1, %v789_v6, %v804_v24 }
  0xbc   :  { %v815_v29 = vsel %vm273_vm1, 0.0, %v814_v25  ;;  %v813_v30 = vperm.slane %v805_v28, %v1705_v27 }
  0xbe   :  { %v820_v31 = vrot.slane %v813_v30, 4 }
  0xbf   :  { %405 = vrot.lane.b32.xlu1 %v380_v46, %s1594_s22 }
  0xc0   :  { %v821_v32 = vsel %vm273_vm1, 0.0, %v820_v31 }
  0xc1   :  { %389 = vrot.lane.b32.xlu0 %v378_v52, %s1595_s23 }
  0xc2   :  { %856 = vrot.lane.b32.xlu2 %v763_v49, %s1591_s19 }
  0xc7   :  { %848 = vrot.lane.b32.xlu1 %v753_v33, %s1589_s17 }
  0xc9   :  { %832 = vrot.lane.b32.xlu0 %v745_v63, %s1590_s18 }
  0xca   :  { %824 = vrot.lane.b32.xlu2 %v759_v0, %s1595_s23 }
  0xcf   :  { %864 = vrot.lane.b32.xlu1 %v757_v4, %s1592_s20 }
  0xd1   :  { %872 = vrot.lane.b32.xlu0 %v765_v15, %s1593_s21 }
  0xd2   :  { %840 = vrot.lane.b32.xlu2 %v761_v17, %s1594_s22 }
  0xd7   :  { %842 = vrot.lane.b32.xlu1 %v817_v20, %s1594_s22 }
  0xd9   :  { %850 = vrot.lane.b32.xlu0 %v809_v21, %s1589_s17 }
  0xda   :  { %834 = vrot.lane.b32.xlu2 %v801_v9, %s1590_s18 }
  0xdf   :  { %858 = vrot.lane.b32.xlu1 %v819_v26, %s1591_s19 }
  0xe1   :  { %826 = vrot.lane.b32.xlu0 %v815_v29, %s1595_s23 }
  0xe2   :  { %866 = vrot.lane.b32.xlu2 %v813_v30, %s1592_s20 }
  0xe9   :  { %874 = vrot.lane.b32.xlu0 %v821_v32, %s1593_s21 }
  0xfc   :  { %v420_v33 = vpop.permute.xlu2 %419 }
 0x104   :  { %v414_v34 = vpop.permute.xlu2 %413 }
 0x10c   :  { %v398_v38 = vpop.permute.xlu2 %397 }
 0x111   :  { %v412_v35 = vpop.permute.xlu1 %411 }
 0x113   :  { %v396_v37 = vpop.permute.xlu0 %395 }
 0x114   :  { %v438_v41 = vpop.permute.xlu2 %437 }
 0x119   :  { %v428_v39 = vpop.permute.xlu1 %427 }
 0x11b   :  { %v436_v40 = vpop.permute.xlu0 %435 }
 0x11c   :  { %v857_v48 = vpop.permute.xlu2 %856 }
 0x121   :  { %v404_v42 = vpop.permute.xlu1 %403 }
 0x123   :  { %v388_v43 = vpop.permute.xlu0 %387 }
 0x124   :  { %v441_v44 = vsel %vm63_vm0, %v1733_v3, %v388_v43  ;;  %v825_v57 = vpop.permute.xlu2 %824 }
 0x125   :  { %v444_v45 = vsel %vm443_vm2, %v441_v44, %v396_v37  ;;  %v878_v4 = vsel %vm63_vm0, %v1773_v50, %v825_v57 }
 0x126   :  { %v447_v46 = vsel %vm446_vm3, %v444_v45, %v404_v42 }
 0x127   :  { %v450_v47 = vsel %vm449_vm4, %v447_v46, %v412_v35  ;;  %v964_v35 = vlaneseq }
 0x128   :  { %v453_v49 = vsel %vm452_vm5, %v450_v47, %v420_v33 }
 0x129   :  { %v422_v51 = vpop.permute.xlu1 %421  ;;  %v456_v52 = vsel %vm455_vm6, %v453_v49, %v428_v39  ;;  %v965_v37 = vand.u32 127, %v964_v35 }
 0x12a   :  { %v459_v53 = vsel %vm458_vm7, %v456_v52, %v436_v40 }
 0x12b   :  { %1521 = vmatpush.xpose.msk.msra.mxu0 %vm909_vm8, %v459_v53  ;;  %v430_v3 = vpop.permute.xlu0 %429  ;;  %v901_v54 = vmul.f32 %v459_v53, %v459_v53 }
 0x12c   :  { %v841_v6 = vpop.permute.xlu2 %840 }
 0x12d   :  { %v903_v55 = vsel %vm894_vm9, %v901_v54, 0.0 }
 0x12e   :  { %904 = vadd.xlane.f32.xlu1 %v903_v55 }
 0x131   :  { %v406_v56 = vpop.permute.xlu1 %405 }
 0x133   :  { %v390_v58 = vpop.permute.xlu0 %389 }
 0x134   :  { %v442_v59 = vsel %vm63_vm0, %v1760_v36, %v390_v58  ;;  %v835_v20 = vpop.permute.xlu2 %834 }
 0x135   :  { %v445_v60 = vsel %vm443_vm2, %v442_v59, %v398_v38 }
 0x136   :  { %v448_v61 = vsel %vm446_vm3, %v445_v60, %v406_v56 }
 0x137   :  { %v451_v62 = vsel %vm449_vm4, %v448_v61, %v414_v34 }
 0x138   :  { %v454_v63 = vsel %vm452_vm5, %v451_v62, %v422_v51  ;;  %v1063_v51 = vshrl.u32 %v964_v35, 7 }
 0x139   :  { %v849_v0 = vpop.permute.xlu1 %848  ;;  %v457_v1 = vsel %vm455_vm6, %v454_v63, %v430_v3 }
 0x13a   :  { %v460_v2 = vsel %vm458_vm7, %v457_v1, %v438_v41  ;;  %1558 = vset.pattern.permute.xlu1 %v1063_v51  ;;  %1559 = vset.pattern.permute.xlu2 %v1063_v51 }
 0x13b   :  { %1523 = vmatpush.xpose.msk.msra.mxu1 %vm909_vm8, %v460_v2  ;;  %v833_v5 = vpop.permute.xlu0 %832  ;;  %v902_v36 = vmul.f32 %v460_v2, %v460_v2  ;;  %1560 = vset.pattern.permute.xlu0 %v1063_v51 }
 0x13c   :  { %v880_v7 = vsel %vm443_vm2, %v878_v4, %v833_v5  ;;  %v867_v30 = vpop.permute.xlu2 %866 }
 0x13d   :  { %v882_v8 = vsel %vm446_vm3, %v880_v7, %v841_v6  ;;  %v906_v9 = vsel %vm894_vm9, %v902_v36, 0.0 }
 0x13e   :  { %907 = vadd.xlane.f32.xlu0 %v906_v9  ;;  %v884_v10 = vsel %vm449_vm4, %v882_v8, %v849_v0 }
 0x13f   :  { %v886_v13 = vsel %vm452_vm5, %v884_v10, %v857_v48 }
 0x141   :  { %v865_v11 = vpop.permute.xlu1 %864 }
 0x142   :  { %v888_v14 = vsel %vm455_vm6, %v886_v13, %v865_v11 }
 0x143   :  { %v873_v50 = vpop.permute.xlu0 %872 }
 0x144   :  { %v890_v15 = vsel %vm458_vm7, %v888_v14, %v873_v50 }
 0x145   :  { %1522 = vmatmul.msk.f32.vlgmr.msra.gmra.mxu0 %vm909_vm8, %v890_v15  ;;  %v892_v16 = vmul.f32 %v890_v15, %v890_v15 }
 0x147   :  { %v895_v17 = vsel %vm894_vm9, %v892_v16, 0.0 }
 0x148   :  { %896 = vadd.xlane.f32.xlu2 %v895_v17 }
 0x149   :  { %v843_v19 = vpop.permute.xlu1 %842 }
 0x14b   :  { %v851_v18 = vpop.permute.xlu0 %850 }
 0x151   :  { %v859_v26 = vpop.permute.xlu1 %858 }
 0x153   :  { %v827_v21 = vpop.permute.xlu0 %826 }
 0x154   :  { %v879_v23 = vsel %vm63_vm0, %v1806_v22, %v827_v21 }
 0x155   :  { %v881_v24 = vsel %vm443_vm2, %v879_v23, %v835_v20 }
 0x156   :  { %v883_v25 = vsel %vm446_vm3, %v881_v24, %v843_v19 }
 0x157   :  { %v885_v28 = vsel %vm449_vm4, %v883_v25, %v851_v18 }
 0x158   :  { %v887_v29 = vsel %vm452_vm5, %v885_v28, %v859_v26 }
 0x159   :  { %v889_v31 = vsel %vm455_vm6, %v887_v29, %v867_v30 }
 0x15b   :  { %v875_v32 = vpop.permute.xlu0 %874 }
 0x15c   :  { %v891_v33 = vsel %vm458_vm7, %v889_v31, %v875_v32 }
 0x15d   :  { %1524 = vmatmul.msk.f32.vlgmr.msra.gmra.mxu1 %vm909_vm8, %v891_v33  ;;  %v893_v34 = vmul.f32 %v891_v33, %v891_v33 }
 0x15f   :  { %v898_v22 = vsel %vm894_vm9, %v893_v34, 0.0 }
 0x160   :  { %899 = vadd.xlane.f32.xlu2 %v898_v22 }
 0x1a1   :  { %v905_v38 = vpop.xlane.xlu1 %904 }
 0x1a2   :  { %v966_v40 = vperm.slane %v905_v38, %v965_v37 }
 0x1b1   :  { %v908_v56 = vpop.xlane.xlu0 %907 }
 0x1b2   :  { %v967_v58 = vperm.slane %v908_v56, %v965_v37 }
 0x1bb   :  { %v897_v39 = vpop.xlane.xlu2 %896 }
 0x1bc   :  { %v976_v42 = vadd.f32 %v966_v40, %v897_v39 }
 0x1c2   :  { %v933_v41 = vpop.f32.mrf.mxu0 }
 0x1c3   :  { %v978_v43 = vmul.f32 2.0, %v933_v41 }
 0x1c5   :  { %v980_v44 = vsub.f32 %v976_v42, %v978_v43 }
 0x1c7   :  { %v982_v45 = vmax.f32 %v980_v44, 0.0 }
 0x1c9   :  { %v984_v46 = vadd.f32 1.0, %v982_v45  ;;  %v987_v47 = vmul.f32 -0.5, %v982_v45  ;;  %v990_v49 = vand.u32 2147483647, %v982_v45 }
 0x1cb   :  { %1565 = vlog2.f32 %v984_v46  ;;  %v988_v48 = vadd.f32 1.0, %v987_v47  ;;  %vm991_vm10 = vcmp.lt.f32.partialorder %v990_v49, 0.0004427343 }
 0x1cd   :  { %v989_v3 = vmul.f32 %v988_v48, %v982_v45 }
 0x1d1   :  { %v1566_v52 = vpop.eup %1565 }
 0x1d2   :  { %v986_v53 = vmul.f32 0.6931472, %v1566_v52 }
 0x1d3   :  { %v900_v57 = vpop.xlane.xlu2 %899 }
 0x1d4   :  { %v992_v54 = vsel %vm991_vm10, %v989_v3, %v986_v53  ;;  %v977_v60 = vadd.f32 %v967_v58, %v900_v57 }
 0x1d5   :  { %v1002_v55 = vadd.f32 1.0, %v992_v54 }
 0x1d7   :  { %1567 = vrcp.f32 %v1002_v55 }
 0x1da   :  { %v959_v59 = vpop.f32.mrf.mxu1 }
 0x1db   :  { %v979_v61 = vmul.f32 2.0, %v959_v59 }
 0x1dd   :  { %v1568_v62 = vpop.eup %1567  ;;  %v981_v63 = vsub.f32 %v977_v60, %v979_v61 }
 0x1de   :  { %v1007_v0 = vsel %vm1006_vm11, %v1568_v62, -inf }
 0x1df   :  { %v983_v1 = vmax.f32 %v981_v63, 0.0  ;;  %v1008_v2 = vrot.slane %v1007_v0, 4 }
 0x1e1   :  { %v993_v4 = vadd.f32 1.0, %v983_v1  ;;  %v1009_v5 = vmax.f32 %v1007_v0, %v1008_v2  ;;  %v996_v36 = vmul.f32 -0.5, %v983_v1  ;;  %v999_v9 = vand.u32 2147483647, %v983_v1  ;;  %v13_v2 = vld [vmem:[%s1969_s1 + $0x10] sm:$0xff] }
 0x1e3   :  { %1569 = vlog2.f32 %v993_v4  ;;  %v1010_v6 = vrot.slane %v1009_v5, 2  ;;  %v997_v8 = vadd.f32 1.0, %v996_v36  ;;  %vm1000_vm12 = vcmp.lt.f32.partialorder %v999_v9, 0.0004427343  ;;  %v1527_v36 = vld [vmem:[%s1968_s0 + $0x90] sm:$0xff] }
 0x1e4   :  { %v16_v4 = vand.u32 2147483647, %v13_v2  ;;  %1537 = vmatpush.xpose.msk.msrb.mxu0 %vm63_vm0, %v1527_v36  ;;  %v1531_v9 = vld [vmem:[%s1968_s0 + $0xb0] sm:$0xff] }
 0x1e5   :  { %v1011_v7 = vmax.f32 %v1009_v5, %v1010_v6  ;;  %v998_v50 = vmul.f32 %v997_v8, %v983_v1  ;;  %v1525_v1 = vld [vmem:[%s1968_s0 + $0x80] sm:$0xff]  ;;  %v1526_v5 = vld [vmem:[%s1968_s0 + $0x88] sm:$0xff]  ;;  %v1528_v6 = vld [vmem:[%s1968_s0 + $0x98] sm:$0xff] }
 0x1e6   :  { %1533 = vmatpush.xpose.msk.msra.mxu2 %vm63_vm0, %v1525_v1  ;;  %1535 = vmatpush.xpose.msk.msra.mxu3 %vm63_vm0, %v1526_v5  ;;  %v1530_v8 = vld [vmem:[%s1968_s0 + $0xa8] sm:$0xff] }
 0x1e7   :  { %v1012_v10 = vrot.slane %v1011_v7, 1  ;;  %1539 = vmatpush.xpose.msk.msrb.mxu1 %vm63_vm0, %v1528_v6 }
 0x1e8   :  { %1545 = vmatpush.xpose.msk.msra.mxu0 %vm63_vm0, %v1531_v9 }
 0x1e9   :  { %v1570_v11 = vpop.eup %1569  ;;  %v1013_v13 = vmax.f32 %v1011_v7, %v1012_v10  ;;  %v1529_v7 = vld [vmem:[%s1968_s0 + $0xa0] sm:$0xff]  ;;  %v1532_v10 = vld [vmem:[%s1968_s0 + $0xb8] sm:$0xff] }
 0x1ea   :  { %v995_v14 = vmul.f32 0.6931472, %v1570_v11  ;;  %1541 = vmatpush.xpose.msk.msrb.mxu2 %vm63_vm0, %v1529_v7  ;;  %1543 = vmatpush.xpose.msk.msrb.mxu3 %vm63_vm0, %v1530_v8 }
 0x1eb   :  { %v1021_v15 = vsub.f32 %v1568_v62, %v1013_v13  ;;  %1547 = vmatpush.xpose.msk.msra.mxu1 %vm63_vm0, %v1532_v10 }
 0x1ec   :  { %v1001_v16 = vsel %vm1000_vm12, %v998_v50, %v995_v14 }
 0x1ed   :  { %v1003_v17 = vadd.f32 1.0, %v1001_v16  ;;  %v1023_v18 = vmul.f32 1.442695, %v1021_v15 }
 0x1ef   :  { %1571 = vrcp.f32 %v1003_v17 }
 0x1f0   :  { %1573 = vpow2.f32 %v1023_v18 }
 0x1f5   :  { %v1572_v19 = vpop.eup %1571 }
 0x1f6   :  { %v1574_v20 = vpop.eup %1573  ;;  %v1014_v21 = vsel %vm1006_vm11, %v1572_v19, -inf }
 0x1f7   :  { %v1027_v23 = vsel %vm1006_vm11, %v1574_v20, 0.0  ;;  %v1015_v24 = vrot.slane %v1014_v21, 4 }
 0x1f8   :  { %v1028_v25 = vrot.slane %v1027_v23, 4 }
 0x1f9   :  { %v1016_v26 = vmax.f32 %v1014_v21, %v1015_v24 }
 0x1fa   :  { %v1029_v28 = vadd.f32 %v1028_v25, %v1027_v23 }
 0x1fb   :  { %v1017_v29 = vrot.slane %v1016_v26, 2 }
 0x1fc   :  { %v1030_v30 = vrot.slane %v1029_v28, 2 }
 0x1fd   :  { %v1018_v31 = vmax.f32 %v1016_v26, %v1017_v29 }
 0x1fe   :  { %v1031_v32 = vadd.f32 %v1030_v30, %v1029_v28 }
 0x1ff   :  { %v1019_v33 = vrot.slane %v1018_v31, 1 }
 0x200   :  { %v1032_v34 = vrot.slane %v1031_v32, 1 }
 0x201   :  { %v1020_v22 = vmax.f32 %v1018_v31, %v1019_v33 }
 0x202   :  { %v1033_v35 = vadd.f32 %v1032_v34, %v1031_v32 }
 0x203   :  { %v1022_v37 = vsub.f32 %v1572_v19, %v1020_v22 }
 0x204   :  { %1575 = vrcp.f32 %v1033_v35 }
 0x205   :  { %v1025_v38 = vmul.f32 1.442695, %v1022_v37 }
 0x207   :  { %1577 = vpow2.f32 %v1025_v38 }
 0x20a   :  { %v1576_v39 = vpop.eup %1575 }
 0x20b   :  { %v1043_v40 = vmul.f32 %v1576_v39, %v1574_v20 }
 0x20d   :  { %v1578_v41 = vpop.eup %1577  ;;  %v1045_v42 = vsel %vm1006_vm11, %v1043_v40, 0.0 }
 0x20e   :  { %v1046_v43 = vrot.slane %v1045_v42, 4  ;;  %v1034_v44 = vsel %vm1006_vm11, %v1578_v41, 0.0 }
 0x20f   :  { %v1035_v45 = vrot.slane %v1034_v44, 4 }
 0x210   :  { %v1047_v46 = vadd.f32 %v1046_v43, %v1045_v42 }
 0x211   :  { %v1036_v47 = vadd.f32 %v1035_v45, %v1034_v44 }
 0x212   :  { %v1048_v48 = vrot.slane %v1047_v46, 2 }
 0x213   :  { %v1037_v49 = vrot.slane %v1036_v47, 2 }
 0x214   :  { %v1049_v51 = vadd.f32 %v1048_v48, %v1047_v46 }
 0x215   :  { %v1038_v52 = vadd.f32 %v1037_v49, %v1036_v47 }
 0x216   :  { %v1050_v53 = vrot.slane %v1049_v51, 1 }
 0x217   :  { %v1039_v3 = vrot.slane %v1038_v52, 1 }
 0x218   :  { %v1051_v54 = vadd.f32 %v1050_v53, %v1049_v51 }
 0x219   :  { %v1040_v55 = vadd.f32 %v1039_v3, %v1038_v52 }
 0x21a   :  { %1066 = vperm.xlu1 %1558, %v1051_v54  }
 0x21b   :  { %1579 = vrcp.f32 %v1040_v55 }
 0x21c   :  { %1581 = vlog2.f32 %v16_v4 }
 0x221   :  { %v1580_v56 = vpop.eup %1579 }
 0x222   :  { %v1044_v57 = vmul.f32 %v1580_v56, %v1578_v41  ;;  %v1582_v11 = vpop.eup %1581 }
 0x223   :  { %v22_v13 = vmul.f32 0.6931472, %v1582_v11 }
 0x224   :  { %v1052_v58 = vsel %vm1006_vm11, %v1044_v57, 0.0 }
 0x225   :  { %v1053_v59 = vrot.slane %v1052_v58, 4  ;;  %v1060_v14 = vrot.slane %v22_v13, 4 }
 0x227   :  { %v1054_v60 = vadd.f32 %v1053_v59, %v1052_v58 }
 0x229   :  { %v1055_v61 = vrot.slane %v1054_v60, 2 }
 0x22b   :  { %v1056_v62 = vadd.f32 %v1055_v61, %v1054_v60 }
 0x22d   :  { %v1057_v63 = vrot.slane %v1056_v62, 1 }
 0x22f   :  { %v1058_v0 = vadd.f32 %v1057_v63, %v1056_v62 }
 0x231   :  { %1072 = vperm.xlu2 %1559, %v1058_v0  }
 0x28b   :  { %v1073_v50 = vpop.permute.xlu2 %1072 }
 0x28c   :  { %v1067_v15 = vpop.permute.xlu1 %1066  ;;  %v1075_v16 = vmul.f32 %v1073_v50, %v1060_v14 }
 0x28d   :  { %v1074_v17 = vmul.f32 %v1067_v15, %v22_v13 }
 0x28e   :  { %v1078_v18 = vmul.f32 1.442695, %v1075_v16 }
 0x28f   :  { %v1076_v19 = vmul.f32 1.442695, %v1074_v17 }
 0x291   :  { %1583 = vpow2.f32 %v1076_v19 }
 0x292   :  { %1585 = vpow2.f32 %v1078_v18 }
 0x297   :  { %v1584_v20 = vpop.eup %1583 }
 0x298   :  { %v1586_v21 = vpop.eup %1585  ;;  %v1097_v23 = vperm.slane %v1584_v20, 0  ;;  %v1091_v24 = vrot.slane %v1584_v20, 1  ;;  %v1092_v25 = vrot.slane %v1584_v20, 2  ;;  %v1093_v26 = vrot.slane %v1584_v20, 3 }
 0x299   :  { %v1094_v32 = vrot.slane %v1586_v21, 1  ;;  %v1095_v35 = vrot.slane %v1586_v21, 2  ;;  %v1096_v37 = vrot.slane %v1586_v21, 3  ;;  %v1101_v38 = vperm.slane %v1586_v21, 0 }
 0x29a   :  { %v1113_v28 = vmul.f32 %v1525_v1, %v1097_v23  ;;  %v1098_v29 = vperm.slane %v1091_v24, 0  ;;  %v1099_v30 = vperm.slane %v1092_v25, 0  ;;  %v1100_v31 = vperm.slane %v1093_v26, 0 }
 0x29b   :  { %v1102_v39 = vperm.slane %v1094_v32, 0  ;;  %v1103_v40 = vperm.slane %v1095_v35, 0  ;;  %v1104_v41 = vperm.slane %v1096_v37, 0  ;;  %v1117_v42 = vmul.f32 %v1529_v7, %v1101_v38 }
 0x29c   :  { %v1114_v33 = vmul.f32 %v1526_v5, %v1098_v29  ;;  %v1115_v34 = vmul.f32 %v1527_v36, %v1099_v30  ;;  %v1116_v22 = vmul.f32 %v1528_v6, %v1100_v31  ;;  %1534 = vmatmul.msk.f32.vlgmr.msra.gmra.mxu2 %vm63_vm0, %v1113_v28 }
 0x29d   :  { %v1118_v43 = vmul.f32 %v1530_v8, %v1102_v39  ;;  %v1119_v44 = vmul.f32 %v1531_v9, %v1103_v40  ;;  %v1120_v45 = vmul.f32 %v1532_v10, %v1104_v41 }
 0x29e   :  { %1536 = vmatmul.msk.f32.vlgmr.msra.gmra.mxu3 %vm63_vm0, %v1114_v33  ;;  %1538 = vmatmul.msk.f32.vlgmr.msrb.gmra.mxu0 %vm63_vm0, %v1115_v34 }
 0x29f   :  { %1540 = vmatmul.msk.f32.vlgmr.msrb.gmra.mxu1 %vm63_vm0, %v1116_v22 }
 0x2a4   :  { %1542 = vmatmul.msk.f32.vlgmr.msrb.gmra.mxu2 %vm63_vm0, %v1117_v42 }
 0x2a6   :  { %1544 = vmatmul.msk.f32.vlgmr.msrb.gmra.mxu3 %vm63_vm0, %v1118_v43  ;;  %1546 = vmatmul.msk.f32.vlgmr.msra.gmra.mxu0 %vm63_vm0, %v1119_v44 }
 0x2a7   :  { %1548 = vmatmul.msk.f32.vlgmr.msra.gmra.mxu1 %vm63_vm0, %v1120_v45 }
 0x31b   :  { %v1196_v46 = vpop.f32.mrf.mxu0 }
 0x31c   :  { %v1222_v47 = vpop.f32.mrf.mxu1  ;;  %v1329_v48 = vrot.slane %v1196_v46, 4 }
 0x31d   :  { %v1341_v51 = vrot.slane %v1222_v47, 4 }
 0x31f   :  { %v1144_v49 = vpop.f32.mrf.mxu2 }
 0x320   :  { %v1330_v52 = vsel %vm273_vm1, %v1329_v48, %v1144_v49  ;;  %v1331_v59 = vrot.slane %v1144_v49, 4 }
 0x321   :  { %v1336_v53 = vperm.slane %v1330_v52, %v1697_v12  ;;  %v1170_v3 = vpop.f32.mrf.mxu3 }
 0x322   :  { %v1342_v54 = vsel %vm273_vm1, %v1341_v51, %v1170_v3  ;;  %v1343_v55 = vrot.slane %v1170_v3, 4  ;;  %v1332_v36 = vsel %vm273_vm1, %v1196_v46, %v1331_v59 }
 0x323   :  { %v1379_v56 = vrot.slane %v1336_v53, 4  ;;  %v1348_v57 = vperm.slane %v1342_v54, %v1697_v12  ;;  %v1300_v58 = vpop.f32.mrf.mxu0  ;;  %v1340_v15 = vperm.slane %v1332_v36, %v1697_v12 }
 0x324   :  { %v1344_v60 = vsel %vm273_vm1, %v1222_v47, %v1343_v55  ;;  %v1326_v61 = vpop.f32.mrf.mxu1  ;;  %v1353_v62 = vrot.slane %v1300_v58, 4 }
 0x325   :  { %v1380_v63 = vsel %vm273_vm1, %v1348_v57, %v1379_v56  ;;  %v1352_v1 = vperm.slane %v1344_v60, %v1697_v12  ;;  %v1365_v2 = vrot.slane %v1326_v61, 4  ;;  %v1377_v13 = vrot.slane %v1348_v57, 4 }
 0x326   :  { %v1388_v11 = vperm.slane %v1380_v63, %v1705_v27  ;;  %v1391_v32 = vrot.slane %v1340_v15, 4 }
 0x327   :  { %v1248_v0 = vpop.f32.mrf.mxu2  ;;  %v1389_v16 = vrot.slane %v1352_v1, 4  ;;  %v1378_v26 = vsel %vm273_vm1, %v1377_v13, %v1336_v53 }
 0x328   :  { %v1354_v4 = vsel %vm273_vm1, %v1353_v62, %v1248_v0  ;;  %v1355_v5 = vrot.slane %v1248_v0, 4  ;;  %v1431_v24 = vrot.slane %v1388_v11, 4  ;;  %v1384_v37 = vperm.slane %v1378_v26, %v1705_v27 }
 0x329   :  { %v1360_v6 = vperm.slane %v1354_v4, %v1697_v12  ;;  %v1274_v7 = vpop.f32.mrf.mxu3  ;;  %v1392_v42 = vsel %vm273_vm1, %v1352_v1, %v1391_v32 }
 0x32a   :  { %v1356_v8 = vsel %vm273_vm1, %v1300_v58, %v1355_v5  ;;  %v1366_v9 = vsel %vm273_vm1, %v1365_v2, %v1274_v7  ;;  %v1367_v10 = vrot.slane %v1274_v7, 4  ;;  %v1427_v45 = vrot.slane %v1384_v37, 4 }
 0x32b   :  { %v1403_v14 = vrot.slane %v1360_v6, 4  ;;  %v1372_v50 = vperm.slane %v1366_v9, %v1697_v12  ;;  %v1364_v18 = vperm.slane %v1356_v8, %v1697_v12  ;;  %v1400_v48 = vperm.slane %v1392_v42, %v1705_v27 }
 0x32c   :  { %v1368_v17 = vsel %vm273_vm1, %v1326_v61, %v1367_v10 }
 0x32d   :  { %v1376_v19 = vperm.slane %v1368_v17, %v1697_v12  ;;  %v1401_v20 = vrot.slane %v1372_v50, 4  ;;  %v1404_v21 = vsel %vm273_vm1, %v1372_v50, %v1403_v14  ;;  %v1415_v33 = vrot.slane %v1364_v18, 4 }
 0x32e   :  { %v1412_v23 = vperm.slane %v1404_v21, %v1705_v27  ;;  %v1390_v12 = vsel %vm273_vm1, %v1389_v16, %v1340_v15  ;;  %v1439_v52 = vrot.slane %v1400_v48, 4 }
 0x32f   :  { %v1413_v25 = vrot.slane %v1376_v19, 4  ;;  %v1402_v28 = vsel %vm273_vm1, %v1401_v20, %v1360_v6  ;;  %v1396_v39 = vperm.slane %v1390_v12, %v1705_v27  ;;  %v1416_v43 = vsel %vm273_vm1, %v1376_v19, %v1415_v33 }
 0x330   :  { %v1432_v29 = vsel %vm273_vm1, %v1412_v23, %v1431_v24  ;;  %v1429_v30 = vrot.slane %v1412_v23, 4  ;;  %v1408_v31 = vperm.slane %v1402_v28, %v1705_v27  ;;  %v1424_v49 = vperm.slane %v1416_v43, %v1705_v27 }
 0x331   :  { %1450 = vrot.lane.b32.xlu0 %v1432_v29, %s1594_s22  ;;  %v1414_v34 = vsel %vm273_vm1, %v1413_v25, %v1364_v18  ;;  %v1435_v47 = vrot.slane %v1396_v39, 4 }
 0x332   :  { %v1430_v22 = vsel %vm273_vm1, %v1429_v30, %v1388_v11  ;;  %v1420_v35 = vperm.slane %v1414_v34, %v1705_v27  ;;  %v1425_v38 = vrot.slane %v1408_v31, 4  ;;  %v1428_v46 = vsel %vm273_vm1, %v1408_v31, %v1427_v45 }
 0x333   :  { %1446 = vrot.lane.b32.xlu1 %v1430_v22, %s1590_s18  ;;  %v1437_v53 = vrot.slane %v1424_v49, 4  ;;  %v1440_v3 = vsel %vm273_vm1, %v1424_v49, %v1439_v52 }
 0x334   :  { %v1433_v40 = vrot.slane %v1420_v35, 4  ;;  %v1426_v41 = vsel %vm273_vm1, %v1425_v38, %v1384_v37  ;;  %v1436_v51 = vsel %vm273_vm1, %v1420_v35, %v1435_v47 }
 0x335   :  { %v1438_v54 = vsel %vm273_vm1, %v1437_v53, %v1400_v48 }
 0x336   :  { %v1434_v44 = vsel %vm273_vm1, %v1433_v40, %v1396_v39 }
 0x337   :  { %1454 = vrot.lane.b32.xlu2 %v1434_v44, %s1589_s17 }
 0x339   :  { %1442 = vrot.lane.b32.xlu0 %v1428_v46, %s1595_s23 }
 0x33b   :  { %1458 = vrot.lane.b32.xlu1 %v1436_v51, %s1591_s19 }
 0x33f   :  { %1466 = vrot.lane.b32.xlu2 %v1440_v3, %s1593_s21 }
 0x341   :  { %1462 = vrot.lane.b32.xlu0 %v1438_v54, %s1592_s20 }
 0x391   :  { %v1455_v57 = vpop.permute.xlu2 %1454 }
 0x399   :  { %v1467_v1 = vpop.permute.xlu2 %1466 }
 0x3a3   :  { %v1451_v55 = vpop.permute.xlu0 %1450 }
 0x3a5   :  { %v1447_v56 = vpop.permute.xlu1 %1446 }
 0x3ab   :  { %v1443_v27 = vpop.permute.xlu0 %1442 }
 0x3ac   :  { %v1469_v58 = vsel %vm63_vm0, %v1426_v41, %v1443_v27 }
 0x3ad   :  { %v1470_v59 = vsel %vm443_vm2, %v1469_v58, %v1447_v56  ;;  %v1459_v62 = vpop.permute.xlu1 %1458 }
 0x3ae   :  { %v1471_v60 = vsel %vm446_vm3, %v1470_v59, %v1451_v55 }
 0x3af   :  { %v1472_v61 = vsel %vm449_vm4, %v1471_v60, %v1455_v57 }
 0x3b0   :  { %v1473_v63 = vsel %vm452_vm5, %v1472_v61, %v1459_v62 }
 0x3b3   :  { %v1463_v0 = vpop.permute.xlu0 %1462 }
 0x3b4   :  { %v1474_v2 = vsel %vm455_vm6, %v1473_v63, %v1463_v0 }
 0x3b5   :  { %v1475_v4 = vsel %vm458_vm7, %v1474_v2, %v1467_v1 }
 0x3b6   :  { %1476 = vst.msk [vmem:[%s1970_s2] sm:$0xff] %vm909_vm8, %v1475_v4 }

</bundles_post_ra>
